<compile_context>
chip_gen: v5e
topology: v5e:2x2
jax: 0.10.0
libtpu: 0.0.40
codegen_flags: <defaults>
</compile_context>

<pallas_src>
import functools

import jax
import jax.numpy as jnp
from jax.experimental import pallas as pl
from jax.experimental.pallas import tpu as pltpu


def _round_up(x, m):
    return ((x + m - 1) // m) * m


def ffn_kernel(x_ref, w12_ref, w3_ref, w4_ref, b4_ref, o_ref):
    # x_ref: (tm, D) f32 | w12_ref: (D, 2D) bf16 | w3_ref/w4_ref: (D, D) bf16
    # b4_ref: (1, D) f32 | o_ref: (tm, D) f32
    D = w3_ref.shape[0]

    x = x_ref[...].astype(w12_ref.dtype)                 # cast in-kernel (VPU, cheap)

    # Fused gate/up projection: one wide MXU matmul, f32 accumulation.
    h = jnp.dot(x, w12_ref[...], preferred_element_type=jnp.float32)  # (tm, 2D) f32
    h1 = h[:, :D]
    h2 = h[:, D:]

    # SWiGLU gate math in f32 (sigmoid on EUP, mul on VPU).
    gated = (h1 * jax.nn.sigmoid(h1)) * h2               # (tm, D) f32

    # Down projection (SWiGLU W3), then FFN output linear (W4) + bias.
    s = jnp.dot(gated.astype(w3_ref.dtype), w3_ref[...],
                preferred_element_type=jnp.float32)      # (tm, D) f32
    out = jnp.dot(s.astype(w4_ref.dtype), w4_ref[...],
                  preferred_element_type=jnp.float32)
    out = out + b4_ref[...]                              # bias broadcast over rows

    o_ref[...] = out.astype(o_ref.dtype)


def prepare_ffn_params(w1, w2, w3, w_out, b_out, weight_dtype=jnp.bfloat16):
    """One-time weight prep (do at init / checkpoint-load time, not per call).

    PyTorch Linear weights are (out, in); we transpose to (in, out), fuse the
    gate/up projections into a single (D, 2D) RHS, and cast to bf16 so the MXU
    runs at full rate and HBM/VMEM weight traffic is halved.
    """
    w12 = jnp.concatenate([w1.T, w2.T], axis=1).astype(weight_dtype)   # (D, 2D)
    w3t = w3.T.astype(weight_dtype)                                    # (D, D)
    w4t = w_out.T.astype(weight_dtype)                                 # (D, D)
    b4 = b_out.reshape(1, -1).astype(jnp.float32)                      # (1, D)
    return w12, w3t, w4t, b4


def ffn_forward(x, params, *, tm=256):
    """x: (B, S, D) f32. params: output of prepare_ffn_params."""
    w12, w3t, w4t, b4 = params
    B, S, D = x.shape
    M = B * S

    # Row-tile sizing: multiple of 8 (f32 sublane), at most tm, pad M to fit.
    m8 = _round_up(M, 8)
    tm = min(tm, m8)
    Mp = _round_up(M, tm)

    x2d = x.reshape(M, D)
    if Mp != M:
        x2d = jnp.pad(x2d, ((0, Mp - M), (0, 0)))

    grid = (Mp // tm,)

    cost = pl.CostEstimate(
        flops=8 * Mp * D * D,                 # 2*Mp*D*2D + 2*Mp*D*D + 2*Mp*D*D
        transcendentals=Mp * D,               # sigmoid
        bytes_accessed=(Mp * D * 4            # x (f32 in)
                        + Mp * D * 4          # out (f32)
                        + (2 * D * D + D * D + D * D) * w12.dtype.itemsize
                        + D * 4),             # bias
    )

    out2d = pl.pallas_call(
        ffn_kernel,
        out_shape=jax.ShapeDtypeStruct((Mp, D), x.dtype),
        grid_spec=pltpu.PrefetchScalarGridSpec(
            num_scalar_prefetch=0,
            grid=grid,
            in_specs=[
                pl.BlockSpec((tm, D), lambda i: (i, 0)),      # x row tile
                pl.BlockSpec((D, 2 * D), lambda i: (0, 0)),   # fused W1|W2 (resident)
                pl.BlockSpec((D, D), lambda i: (0, 0)),       # W3 (resident)
                pl.BlockSpec((D, D), lambda i: (0, 0)),       # W4 (resident)
                pl.BlockSpec((1, D), lambda i: (0, 0)),       # bias (resident)
            ],
            out_specs=pl.BlockSpec((tm, D), lambda i: (i, 0)),
        ),
        compiler_params=pltpu.CompilerParams(
            dimension_semantics=("parallel",),
            vmem_limit_bytes=64 * 1024 * 1024,
        ),
        cost_estimate=cost,
    )(x2d, w12, w3t, w4t, b4)

    return out2d[:M].reshape(B, S, D)


def ffn_ref(x, w1, w2, w3, w_out, b_out):
    h1 = x @ w1.T
    h2 = x @ w2.T
    s = (h1 * jax.nn.sigmoid(h1)) * h2
    y = s @ w3.T
    return y @ w_out.T + b_out


if __name__ == "__main__":
    # Small shapes consistent with the module: batch=2, seq=8 (block_size
    # stand-in), embeddings_dims=384 (the real width; 3*128, lane-aligned).
    B, S, D = 2, 8, 384
    key = jax.random.PRNGKey(0)
    kx, k1, k2, k3, k4, kb = jax.random.split(key, 6)

    x = jax.random.normal(kx, (B, S, D), dtype=jnp.float32)

    # PyTorch Linear-style (out_features, in_features) weights, uniform init.
    bound = 1.0 / (D ** 0.5)
    w1 = jax.random.uniform(k1, (D, D), jnp.float32, -bound, bound)
    w2 = jax.random.uniform(k2, (D, D), jnp.float32, -bound, bound)
    w3 = jax.random.uniform(k3, (D, D), jnp.float32, -bound, bound)
    w_out = jax.random.uniform(k4, (D, D), jnp.float32, -bound, bound)
    b_out = jax.random.uniform(kb, (D,), jnp.float32, -bound, bound)

    # One-time weight prep (hoisted out of the forward path).
    params = prepare_ffn_params(w1, w2, w3, w_out, b_out)

    out = jax.block_until_ready(ffn_forward(x, params))
    ref = ffn_ref(x, w1, w2, w3, w_out, b_out)

    assert out.shape == (B, S, D)
    # bf16 weights / intermediates with f32 accumulation: ~1% relative error.
    assert jnp.allclose(out, ref, atol=2e-2, rtol=2e-2), (
        float(jnp.max(jnp.abs(out - ref))))
    print("KERNEL_OK")
</pallas_src>

<mosaic_0001>
module attributes {stable_mosaic.version = 11 : i64} {
  func.func @ffn_kernel(%arg0: i32, %arg1: memref<16x384xf32, #tpu.memory_space<vmem>>, %arg2: memref<384x768xbf16, #tpu.memory_space<vmem>>, %arg3: memref<384x384xbf16, #tpu.memory_space<vmem>>, %arg4: memref<384x384xbf16, #tpu.memory_space<vmem>>, %arg5: memref<1x384xf32, #tpu.memory_space<vmem>>, %arg6: memref<16x384xf32, #tpu.memory_space<vmem>>) attributes {dimension_semantics = [#tpu.dimension_semantics<parallel>], iteration_bounds = array<i64: 1>, scalar_prefetch = 0 : i64, scratch_operands = 0 : i64, tpu.core_type = #tpu.core_type<tc>, window_params = [{transform_indices = @transform_0, window_bounds = array<i64: 16, 384>}, {pipeline_mode = #tpu.pipeline_mode<synchronous>, transform_indices = @transform_1, window_bounds = array<i64: 384, 768>}, {pipeline_mode = #tpu.pipeline_mode<synchronous>, transform_indices = @transform_2, window_bounds = array<i64: 384, 384>}, {pipeline_mode = #tpu.pipeline_mode<synchronous>, transform_indices = @transform_3, window_bounds = array<i64: 384, 384>}, {pipeline_mode = #tpu.pipeline_mode<synchronous>, transform_indices = @transform_4, window_bounds = array<i64: 1, 384>}, {transform_indices = @transform_5, window_bounds = array<i64: 16, 384>}]} {
    %c0 = arith.constant 0 : index
    %c0_0 = arith.constant 0 : index
    %0 = vector.load %arg1[%c0, %c0_0] : memref<16x384xf32, #tpu.memory_space<vmem>>, vector<16x384xf32>
    %1 = arith.truncf %0 : vector<16x384xf32> to vector<16x384xbf16>
    %c0_1 = arith.constant 0 : index
    %c0_2 = arith.constant 0 : index
    %2 = vector.load %arg2[%c0_1, %c0_2] : memref<384x768xbf16, #tpu.memory_space<vmem>>, vector<384x768xbf16>
    %cst = arith.constant dense<0.000000e+00> : vector<16x768xf32>
    %3 = tpu.matmul %1, %2, %cst {dimension_numbers = #tpu.dot_dimension_numbers<[1], [0], [0], [1], [0, 0, 1, 1], [], []>} : vector<16x384xbf16>, vector<384x768xbf16>, vector<16x768xf32> -> vector<16x768xf32>
    %4 = vector.extract_strided_slice %3 {offsets = [0, 0], sizes = [16, 384], strides = [1, 1]} : vector<16x768xf32> to vector<16x384xf32>
    %5 = vector.extract_strided_slice %3 {offsets = [0, 384], sizes = [16, 384], strides = [1, 1]} : vector<16x768xf32> to vector<16x384xf32>
    %6 = arith.negf %4 : vector<16x384xf32>
    %7 = math.exp %6 : vector<16x384xf32>
    %cst_3 = arith.constant 1.000000e+00 : f32
    %8 = vector.broadcast %cst_3 : f32 to vector<16x384xf32>
    %9 = arith.addf %8, %7 : vector<16x384xf32>
    %10 = arith.divf %8, %9 : vector<16x384xf32>
    %11 = arith.mulf %4, %10 : vector<16x384xf32>
    %12 = arith.mulf %11, %5 : vector<16x384xf32>
    %13 = arith.truncf %12 : vector<16x384xf32> to vector<16x384xbf16>
    %c0_4 = arith.constant 0 : index
    %c0_5 = arith.constant 0 : index
    %14 = vector.load %arg3[%c0_4, %c0_5] : memref<384x384xbf16, #tpu.memory_space<vmem>>, vector<384x384xbf16>
    %cst_6 = arith.constant dense<0.000000e+00> : vector<16x384xf32>
    %15 = tpu.matmul %13, %14, %cst_6 {dimension_numbers = #tpu.dot_dimension_numbers<[1], [0], [0], [1], [0, 0, 1, 1], [], []>} : vector<16x384xbf16>, vector<384x384xbf16>, vector<16x384xf32> -> vector<16x384xf32>
    %16 = arith.truncf %15 : vector<16x384xf32> to vector<16x384xbf16>
    %c0_7 = arith.constant 0 : index
    %c0_8 = arith.constant 0 : index
    %17 = vector.load %arg4[%c0_7, %c0_8] : memref<384x384xbf16, #tpu.memory_space<vmem>>, vector<384x384xbf16>
    %cst_9 = arith.constant dense<0.000000e+00> : vector<16x384xf32>
    %18 = tpu.matmul %16, %17, %cst_9 {dimension_numbers = #tpu.dot_dimension_numbers<[1], [0], [0], [1], [0, 0, 1, 1], [], []>} : vector<16x384xbf16>, vector<384x384xbf16>, vector<16x384xf32> -> vector<16x384xf32>
    %c0_10 = arith.constant 0 : index
    %c0_11 = arith.constant 0 : index
    %19 = vector.load %arg5[%c0_10, %c0_11] : memref<1x384xf32, #tpu.memory_space<vmem>>, vector<1x384xf32>
    %20 = vector.broadcast %19 : vector<1x384xf32> to vector<16x384xf32>
    %21 = arith.addf %18, %20 : vector<16x384xf32>
    %c0_12 = arith.constant 0 : index
    %c0_13 = arith.constant 0 : index
    %22 = vector.load %arg6[%c0_12, %c0_13] : memref<16x384xf32, #tpu.memory_space<vmem>>, vector<16x384xf32>
    tpu.vector_store %arg6[%c0_12, %c0_13], %21 {strides = array<i32>} : memref<16x384xf32, #tpu.memory_space<vmem>>, vector<16x384xf32>,
    return
  }
  func.func @transform_0(%arg0: i32) -> (i32, i32) {
    %c0_i32 = arith.constant 0 : i32
    %c0_i32_0 = arith.constant 0 : i32
    return %arg0, %c0_i32 : i32, i32
  }
  func.func @transform_1(%arg0: i32) -> (i32, i32) {
    %c0_i32 = arith.constant 0 : i32
    %c0_i32_0 = arith.constant 0 : i32
    %c0_i32_1 = arith.constant 0 : i32
    return %c0_i32, %c0_i32_0 : i32, i32
  }
  func.func @transform_2(%arg0: i32) -> (i32, i32) {
    %c0_i32 = arith.constant 0 : i32
    %c0_i32_0 = arith.constant 0 : i32
    %c0_i32_1 = arith.constant 0 : i32
    return %c0_i32, %c0_i32_0 : i32, i32
  }
  func.func @transform_3(%arg0: i32) -> (i32, i32) {
    %c0_i32 = arith.constant 0 : i32
    %c0_i32_0 = arith.constant 0 : i32
    %c0_i32_1 = arith.constant 0 : i32
    return %c0_i32, %c0_i32_0 : i32, i32
  }
  func.func @transform_4(%arg0: i32) -> (i32, i32) {
    %c0_i32 = arith.constant 0 : i32
    %c0_i32_0 = arith.constant 0 : i32
    %c0_i32_1 = arith.constant 0 : i32
    return %c0_i32, %c0_i32_0 : i32, i32
  }
  func.func @transform_5(%arg0: i32) -> (i32, i32) {
    %c0_i32 = arith.constant 0 : i32
    %c0_i32_0 = arith.constant 0 : i32
    return %arg0, %c0_i32 : i32, i32
  }
}

</mosaic_0001>

<bundles_post_ra>
// kernel: tpu_custom_call.1
= control target key start
LH: loop header
LB: loop body
LE: loop exit
PB: predicated region body
PF: predicated region fallthrough
CT: control target
= control target key end

     0   :  { %10 = vsyncpa [#allocation3], 0  ;;  %s4479_s0 = inlined_call_operand.hbm [shape: f32[16,384], index: 0, kind: input, shape index: {}]   ;;  %s4480_s1 = inlined_call_operand.hbm [shape: bf16[384,768], index: 1, kind: input, shape index: {}]   ;;  %s4481_s2 = inlined_call_operand.hbm [shape: bf16[384,384], index: 2, kind: input, shape index: {}]   ;;  %s4482_s3 = inlined_call_operand.hbm [shape: bf16[384,384], index: 3, kind: input, shape index: {}]   ;;  %s4483_s4 = inlined_call_operand.vmem [shape: f32[1,384], index: 4, kind: input, shape index: {}]   ;;  %s4484_s5 = inlined_call_operand.hbm [shape: f32[16,384], index: 5, kind: output, shape index: {}]  }
   0x1   :  { %11 = vsyncpa [#allocation6], 0 }
   0x2   :  { %12 = vsyncpa [#allocation9], 0 }
   0x3   :  { %13 = vsyncpa [#allocation4], 0  ;;  %s31_s20 = sshll.u32 %s4480_s1, 4  ;;  %s4195_s21 = smov [#allocation5]   ;;  %s32_s20 = int_to_ptr.hbm [resolvable:$true] %s31_s20 }
   0x4   :  { %s33_s22 = sshll.u32 %s4195_s21, 4  ;;  %s18_s25 = sshll.u32 %s4479_s0, 4  ;;  %s34_s22 = int_to_ptr.vmem [resolvable:$true] %s33_s22  ;;  %s19_s25 = int_to_ptr.hbm [resolvable:$true] %s18_s25 }
   0x5   :  { %s4196_s26 = smov 384   ;;  %s4197_s27 = smov 24  }
   0x6   :  { %39 = dma.hbm_to_vmem [thread:$0]  %s32_s20, 18432, %s34_s22, [#allocation6], %s4196_s26, %s4196_s26, %s4197_s27  }
   0x7   :  { %s4198_s28 = smov [#allocation2]   ;;  %s44_s1 = sshll.u32 %s4481_s2, 4  ;;  %s45_s1 = int_to_ptr.hbm [resolvable:$true] %s44_s1 }
   0x8   :  { %s20_s29 = sshll.u32 %s4198_s28, 4  ;;  %s4199_s0 = smov [#allocation7]   ;;  %s21_s29 = int_to_ptr.vmem [resolvable:$true] %s20_s29 }
   0x9   :  { %26 = dma.hbm_to_vmem [thread:$0]  %s19_s25, 768, %s21_s29, [#allocation3], %s4196_s26, %s4196_s26, %s4197_s27  }
   0xa   :  { %s46_s7 = sshll.u32 %s4199_s0, 4  ;;  %s57_s10 = sshll.u32 %s4482_s3, 4  ;;  %s47_s7 = int_to_ptr.vmem [resolvable:$true] %s46_s7  ;;  %s58_s10 = int_to_ptr.hbm [resolvable:$true] %s57_s10 }
   0xb   :  { %s4200_s11 = smov 192   ;;  %s4201_s12 = smov 12  }
   0xc   :  { %52 = dma.hbm_to_vmem [thread:$0]  %s45_s1, 9216, %s47_s7, [#allocation6], %s4200_s11, %s4200_s11, %s4201_s12  }
   0xd   :  { %s4202_s13 = smov [#allocation8]  }
   0xe   :  { %s59_s14 = sshll.u32 %s4202_s13, 4  ;;  %s60_s14 = int_to_ptr.vmem [resolvable:$true] %s59_s14 }
   0xf   :  { %65 = dma.hbm_to_vmem [thread:$0]  %s58_s10, 9216, %s60_s14, [#allocation9], %s4200_s11, %s4200_s11, %s4201_s12  }
  0x10   :  { %4187 = dma.done.wait [#allocation3], 768  }
  0x11   :  { %4188 = vsyncadd [#allocation3], 4294966528 }
  0x12   :  { %4189 = dma.done.wait [#allocation6], 27648  }
  0x13   :  { %4190 = vsyncadd [#allocation6], 4294939648 }
  0x14   :  { %4191 = dma.done.wait [#allocation9], 9216  }
  0x15   :  { %4192 = vsyncadd [#allocation9], 4294958080  ;;  %v2758_v0 = vld [vmem:[#allocation5 + $0x150] sm:$0xf]  ;;  %v3791_v1 = vld [vmem:[#allocation5 + $0x164] sm:$0xf0] }
  0x16   :  { %v2950_v2 = vld [vmem:[#allocation5 + $0x2d0] sm:$0xf]  ;;  %v2759_v3 = vor.u32 %v3791_v1, %v2758_v0  ;;  %v3839_v4 = vld [vmem:[#allocation5 + $0x2e4] sm:$0xf0]  ;;  %v3788_v9 = vld [vmem:[#allocation5 + $0x154] sm:$0xf] }
  0x17   :  { %v3142_v5 = vld [vmem:[#allocation5 + $0x450] sm:$0xf]  ;;  %v3887_v6 = vld [vmem:[#allocation5 + $0x464] sm:$0xf0]  ;;  %v2951_v7 = vor.u32 %v3839_v4, %v2950_v2  ;;  %v2760_v10 = vld [vmem:[#allocation5 + $0x168] sm:$0xf0] }
  0x18   :  { %v3143_v8 = vor.u32 %v3887_v6, %v3142_v5  ;;  %v2734_v11 = vld [vmem:[#allocation5 + $0x120] sm:$0xf]  ;;  %957 = vmatpush.bf16.msra.mxu0 %v2759_v3  ;;  %v2763_v12 = vor.u32 %v3788_v9, %v2760_v10  ;;  %v3785_v13 = vld [vmem:[#allocation5 + $0x134] sm:$0xf0]  ;;  %v3782_v20 = vld [vmem:[#allocation5 + $0x124] sm:$0xf] }
  0x19   :  { %v2926_v14 = vld [vmem:[#allocation5 + $0x2a0] sm:$0xf]  ;;  %v3833_v15 = vld [vmem:[#allocation5 + $0x2b4] sm:$0xf0]  ;;  %971 = vmatpush.bf16.msra.mxu1 %v2951_v7  ;;  %v2735_v16 = vor.u32 %v3785_v13, %v2734_v11  ;;  %v2736_v22 = vld [vmem:[#allocation5 + $0x138] sm:$0xf0] }
  0x1a   :  { %985 = vmatpush.bf16.msra.mxu2 %v3143_v8  ;;  %v2927_v17 = vor.u32 %v3833_v15, %v2926_v14  ;;  %v3118_v18 = vld [vmem:[#allocation5 + $0x420] sm:$0xf]  ;;  %v3881_v19 = vld [vmem:[#allocation5 + $0x434] sm:$0xf0]  ;;  %999 = vmatpush.bf16.msra.mxu3 %v2763_v12  ;;  %v2710_v23 = vld [vmem:[#allocation5 + $0xf0] sm:$0xf]  ;;  %v2739_v25 = vor.u32 %v3782_v20, %v2736_v22 }
  0x1b   :  { %v3119_v21 = vor.u32 %v3881_v19, %v3118_v18  ;;  %v3779_v24 = vld [vmem:[#allocation5 + $0x104] sm:$0xf0]  ;;  %v2902_v26 = vld [vmem:[#allocation5 + $0x270] sm:$0xf]  ;;  %v3776_v31 = vld [vmem:[#allocation5 + $0xf4] sm:$0xf] }
  0x1c   :  { %v3827_v27 = vld [vmem:[#allocation5 + $0x284] sm:$0xf0]  ;;  %v3094_v28 = vld [vmem:[#allocation5 + $0x3f0] sm:$0xf]  ;;  %958 = vmatpush.bf16.msra.mxu0 %v2735_v16  ;;  %v2711_v29 = vor.u32 %v3779_v24, %v2710_v23  ;;  %v2712_v32 = vld [vmem:[#allocation5 + $0x108] sm:$0xf0] }
  0x1d   :  { %v3875_v30 = vld [vmem:[#allocation5 + $0x404] sm:$0xf0]  ;;  %972 = vmatpush.bf16.msra.mxu1 %v2927_v17  ;;  %v2903_v33 = vor.u32 %v3827_v27, %v2902_v26  ;;  %v2686_v35 = vld [vmem:[#allocation5 + $0xc0] sm:$0xf]  ;;  %v3773_v36 = vld [vmem:[#allocation5 + $0xd4] sm:$0xf0]  ;;  %v2715_v38 = vor.u32 %v3776_v31, %v2712_v32 }
  0x1e   :  { %986 = vmatpush.bf16.msra.mxu2 %v3119_v21  ;;  %v3095_v34 = vor.u32 %v3875_v30, %v3094_v28  ;;  %v2878_v37 = vld [vmem:[#allocation5 + $0x240] sm:$0xf]  ;;  %1000 = vmatpush.bf16.msra.mxu3 %v2739_v25  ;;  %v3821_v39 = vld [vmem:[#allocation5 + $0x254] sm:$0xf0]  ;;  %v3770_v42 = vld [vmem:[#allocation5 + $0xc4] sm:$0xf]  ;;  %v2687_v44 = vor.u32 %v3773_v36, %v2686_v35 }
  0x1f   :  { %v3070_v40 = vld [vmem:[#allocation5 + $0x3c0] sm:$0xf]  ;;  %v3869_v41 = vld [vmem:[#allocation5 + $0x3d4] sm:$0xf0]  ;;  %v2688_v43 = vld [vmem:[#allocation5 + $0xd8] sm:$0xf0]  ;;  %v2879_v45 = vor.u32 %v3821_v39, %v2878_v37 }
  0x20   :  { %959 = vmatpush.bf16.msra.mxu0 %v2711_v29  ;;  %v3071_v46 = vor.u32 %v3869_v41, %v3070_v40  ;;  %v2662_v47 = vld [vmem:[#allocation5 + $0x90] sm:$0xf]  ;;  %v3767_v48 = vld [vmem:[#allocation5 + $0xa4] sm:$0xf0]  ;;  %v2691_v50 = vor.u32 %v3770_v42, %v2688_v43  ;;  %v3764_v54 = vld [vmem:[#allocation5 + $0x94] sm:$0xf] }
  0x21   :  { %973 = vmatpush.bf16.msra.mxu1 %v2903_v33  ;;  %v2854_v49 = vld [vmem:[#allocation5 + $0x210] sm:$0xf]  ;;  %v3815_v51 = vld [vmem:[#allocation5 + $0x224] sm:$0xf0]  ;;  %v2664_v55 = vld [vmem:[#allocation5 + $0xa8] sm:$0xf0]  ;;  %v2663_v56 = vor.u32 %v3767_v48, %v2662_v47 }
  0x22   :  { %987 = vmatpush.bf16.msra.mxu2 %v3095_v34  ;;  %1001 = vmatpush.bf16.msra.mxu3 %v2715_v38  ;;  %v3046_v52 = vld [vmem:[#allocation5 + $0x390] sm:$0xf]  ;;  %v3863_v53 = vld [vmem:[#allocation5 + $0x3a4] sm:$0xf0]  ;;  %v2855_v57 = vor.u32 %v3815_v51, %v2854_v49  ;;  %v2638_v59 = vld [vmem:[#allocation5 + $0x60] sm:$0xf]  ;;  %v2667_v62 = vor.u32 %v3764_v54, %v2664_v55 }
  0x23   :  { %v3047_v58 = vor.u32 %v3863_v53, %v3046_v52  ;;  %v3761_v60 = vld [vmem:[#allocation5 + $0x74] sm:$0xf0]  ;;  %v2830_v61 = vld [vmem:[#allocation5 + $0x1e0] sm:$0xf]  ;;  %v3758_v2 = vld [vmem:[#allocation5 + $0x64] sm:$0xf] }
  0x24   :  { %960 = vmatpush.bf16.msra.mxu0 %v2687_v44  ;;  %v3809_v63 = vld [vmem:[#allocation5 + $0x1f4] sm:$0xf0]  ;;  %v3022_v0 = vld [vmem:[#allocation5 + $0x360] sm:$0xf]  ;;  %v2640_v3 = vld [vmem:[#allocation5 + $0x78] sm:$0xf0]  ;;  %v2639_v4 = vor.u32 %v3761_v60, %v2638_v59 }
  0x25   :  { %974 = vmatpush.bf16.msra.mxu1 %v2879_v45  ;;  %v3857_v1 = vld [vmem:[#allocation5 + $0x374] sm:$0xf0]  ;;  %v2614_v5 = vld [vmem:[#allocation5 + $0x30] sm:$0xf]  ;;  %v2831_v6 = vor.u32 %v3809_v63, %v2830_v61  ;;  %v3755_v8 = vld [vmem:[#allocation5 + $0x44] sm:$0xf0]  ;;  %v2643_v11 = vor.u32 %v3758_v2, %v2640_v3 }
  0x26   :  { %988 = vmatpush.bf16.msra.mxu2 %v3071_v46  ;;  %1002 = vmatpush.bf16.msra.mxu3 %v2691_v50  ;;  %v3023_v7 = vor.u32 %v3857_v1, %v3022_v0  ;;  %v2806_v9 = vld [vmem:[#allocation5 + $0x1b0] sm:$0xf]  ;;  %v3803_v10 = vld [vmem:[#allocation5 + $0x1c4] sm:$0xf0]  ;;  %v3752_v14 = vld [vmem:[#allocation5 + $0x34] sm:$0xf]  ;;  %v2615_v18 = vor.u32 %v3755_v8, %v2614_v5 }
  0x27   :  { %v2998_v12 = vld [vmem:[#allocation5 + $0x330] sm:$0xf]  ;;  %v3851_v13 = vld [vmem:[#allocation5 + $0x344] sm:$0xf0]  ;;  %v2616_v15 = vld [vmem:[#allocation5 + $0x48] sm:$0xf0]  ;;  %v2807_v22 = vor.u32 %v3803_v10, %v2806_v9 }
  0x28   :  { %961 = vmatpush.bf16.msra.mxu0 %v2663_v56  ;;  %v2590_v16 = vld [vmem:[#allocation5] sm:$0xf]  ;;  %v3749_v17 = vld [vmem:[#allocation5 + $0x14] sm:$0xf0]  ;;  %v2999_v23 = vor.u32 %v3851_v13, %v2998_v12  ;;  %v3836_v25 = vld [vmem:[#allocation5 + $0x2d4] sm:$0xf]  ;;  %v2619_v27 = vor.u32 %v3752_v14, %v2616_v15 }
  0x29   :  { %975 = vmatpush.bf16.msra.mxu1 %v2855_v57  ;;  %v2782_v19 = vld [vmem:[#allocation5 + $0x180] sm:$0xf]  ;;  %v3797_v20 = vld [vmem:[#allocation5 + $0x194] sm:$0xf0]  ;;  %v2952_v26 = vld [vmem:[#allocation5 + $0x2e8] sm:$0xf0]  ;;  %v2591_v34 = vor.u32 %v3749_v17, %v2590_v16 }
  0x2a   :  { %989 = vmatpush.bf16.msra.mxu2 %v3047_v58  ;;  %1003 = vmatpush.bf16.msra.mxu3 %v2667_v62  ;;  %v2974_v21 = vld [vmem:[#allocation5 + $0x300] sm:$0xf]  ;;  %v3845_v24 = vld [vmem:[#allocation5 + $0x314] sm:$0xf0]  ;;  %v3884_v28 = vld [vmem:[#allocation5 + $0x454] sm:$0xf]  ;;  %v2783_v38 = vor.u32 %v3797_v20, %v2782_v19  ;;  %v2955_v43 = vor.u32 %v3836_v25, %v2952_v26 }
  0x2b   :  { %v3144_v29 = vld [vmem:[#allocation5 + $0x468] sm:$0xf0]  ;;  %v2766_v30 = vld [vmem:[#allocation5 + $0x158] sm:$0xf]  ;;  %v3792_v31 = vld [vmem:[#allocation5 + $0x16c] sm:$0xf0]  ;;  %v2975_v39 = vor.u32 %v3845_v24, %v2974_v21 }
  0x2c   :  { %962 = vmatpush.bf16.msra.mxu0 %v2639_v4  ;;  %v3746_v32 = vld [vmem:[#allocation5 + $0x4] sm:$0xf]  ;;  %v2592_v33 = vld [vmem:[#allocation5 + $0x18] sm:$0xf0]  ;;  %v2958_v37 = vld [vmem:[#allocation5 + $0x2d8] sm:$0xf]  ;;  %v3147_v44 = vor.u32 %v3884_v28, %v3144_v29  ;;  %v2767_v48 = vor.u32 %v3792_v31, %v2766_v30 }
  0x2d   :  { %976 = vmatpush.bf16.msra.mxu1 %v2831_v6  ;;  %v86_v35 = vld [vmem:[#allocation2 + $0x10] sm:$0xff]  ;;  %v89_v36 = vld [vmem:[#allocation2 + $0x28] sm:$0xff]  ;;  %v3840_v40 = vld [vmem:[#allocation5 + $0x2ec] sm:$0xf0]  ;;  %v2595_v49 = vor.u32 %v3746_v32, %v2592_v33  ;;  %s2573_s18 = sshll.u32 %s4484_s5, 4  ;;  %s2574_s18 = int_to_ptr.hbm [resolvable:$true] %s2573_s18 }
  0x2e   :  { %990 = vmatpush.bf16.msra.mxu2 %v3023_v7  ;;  %1004 = vmatpush.bf16.msra.mxu3 %v2643_v11  ;;  %v3830_v41 = vld [vmem:[#allocation5 + $0x2a4] sm:$0xf]  ;;  %v84_v42 = vld [vmem:[#allocation2] sm:$0xff]  ;;  %v87_v45 = vld [vmem:[#allocation2 + $0x18] sm:$0xff]  ;;  %v4252_v53 = vpack.c.bf16 %v89_v36, %v86_v35  ;;  %v2959_v54 = vor.u32 %v3840_v40, %v2958_v37 }
  0x2f   :  { %v85_v46 = vld [vmem:[#allocation2 + $0x8] sm:$0xff]  ;;  %v88_v47 = vld [vmem:[#allocation2 + $0x20] sm:$0xff]  ;;  %v3878_v51 = vld [vmem:[#allocation5 + $0x424] sm:$0xf]  ;;  %v4254_v57 = vpack.c.bf16 %v87_v45, %v84_v42 }
  0x30   :  { %963 = vmatpush.bf16.msra.mxu0 %v2615_v18  ;;  %v2928_v50 = vld [vmem:[#allocation5 + $0x2b8] sm:$0xf0]  ;;  %v2742_v55 = vld [vmem:[#allocation5 + $0x128] sm:$0xf]  ;;  %v3786_v56 = vld [vmem:[#allocation5 + $0x13c] sm:$0xf0]  ;;  %v4256_v58 = vpack.c.bf16 %v88_v47, %v85_v46 }
  0x31   :  { %977 = vmatpush.bf16.msra.mxu1 %v2807_v22  ;;  %v3120_v52 = vld [vmem:[#allocation5 + $0x438] sm:$0xf0]  ;;  %v2934_v59 = vld [vmem:[#allocation5 + $0x2a8] sm:$0xf]  ;;  %v3834_v60 = vld [vmem:[#allocation5 + $0x2bc] sm:$0xf0]  ;;  %v2931_v61 = vor.u32 %v3830_v41, %v2928_v50  ;;  %v2743_v0 = vor.u32 %v3786_v56, %v2742_v55 }
  0x32   :  { %991 = vmatpush.bf16.msra.mxu2 %v2999_v23  ;;  %1005 = vmatpush.bf16.msra.mxu3 %v2619_v27  ;;  %v3123_v62 = vor.u32 %v3878_v51, %v3120_v52  ;;  %v3824_v63 = vld [vmem:[#allocation5 + $0x274] sm:$0xf]  ;;  %v2904_v1 = vld [vmem:[#allocation5 + $0x288] sm:$0xf0]  ;;  %v2935_v4 = vor.u32 %v3834_v60, %v2934_v59  ;;  %v2718_v5 = vld [vmem:[#allocation5 + $0xf8] sm:$0xf] }
  0x33   :  { %v3872_v2 = vld [vmem:[#allocation5 + $0x3f4] sm:$0xf]  ;;  %v3096_v3 = vld [vmem:[#allocation5 + $0x408] sm:$0xf0]  ;;  %v3780_v6 = vld [vmem:[#allocation5 + $0x10c] sm:$0xf0]  ;;  %v2907_v9 = vor.u32 %v3824_v63, %v2904_v1 }
  0x34   :  { %964 = vmatpush.bf16.msra.mxu0 %v2591_v34  ;;  %v2910_v7 = vld [vmem:[#allocation5 + $0x278] sm:$0xf]  ;;  %v3828_v8 = vld [vmem:[#allocation5 + $0x28c] sm:$0xf0]  ;;  %v3099_v10 = vor.u32 %v3872_v2, %v3096_v3  ;;  %v3818_v11 = vld [vmem:[#allocation5 + $0x244] sm:$0xf]  ;;  %v2719_v12 = vor.u32 %v3780_v6, %v2718_v5 }
  0x35   :  { %978 = vmatpush.bf16.msra.mxu1 %v2783_v38  ;;  %v2880_v13 = vld [vmem:[#allocation5 + $0x258] sm:$0xf0]  ;;  %v3866_v14 = vld [vmem:[#allocation5 + $0x3c4] sm:$0xf]  ;;  %v2911_v16 = vor.u32 %v3828_v8, %v2910_v7  ;;  %v2694_v17 = vld [vmem:[#allocation5 + $0xc8] sm:$0xf] }
  0x36   :  { %992 = vmatpush.bf16.msra.mxu2 %v2975_v39  ;;  %1006 = vmatpush.bf16.msra.mxu3 %v2595_v49  ;;  %v3072_v15 = vld [vmem:[#allocation5 + $0x3d8] sm:$0xf0]  ;;  %v3774_v18 = vld [vmem:[#allocation5 + $0xdc] sm:$0xf0]  ;;  %v2886_v19 = vld [vmem:[#allocation5 + $0x248] sm:$0xf]  ;;  %v2883_v21 = vor.u32 %v3818_v11, %v2880_v13 }
  0x37   :  { %965 = vmatmul.bf16.vlgmr.msra.gmra.mxu0 %v4254_v57  ;;  %v3822_v20 = vld [vmem:[#allocation5 + $0x25c] sm:$0xf0]  ;;  %v3075_v22 = vor.u32 %v3866_v14, %v3072_v15  ;;  %v3812_v23 = vld [vmem:[#allocation5 + $0x214] sm:$0xf]  ;;  %v2695_v24 = vor.u32 %v3774_v18, %v2694_v17  ;;  %v2856_v25 = vld [vmem:[#allocation5 + $0x228] sm:$0xf0] }
  0x38   :  { %1013 = vmatpush.bf16.msrb.mxu0 %v2955_v43  ;;  %979 = vmatmul.bf16.vlgmr.msra.gmra.mxu1 %v4256_v58  ;;  %v3860_v26 = vld [vmem:[#allocation5 + $0x394] sm:$0xf]  ;;  %v3048_v27 = vld [vmem:[#allocation5 + $0x3a8] sm:$0xf0]  ;;  %v2887_v28 = vor.u32 %v3822_v20, %v2886_v19  ;;  %v2670_v29 = vld [vmem:[#allocation5 + $0x98] sm:$0xf]  ;;  %v2859_v33 = vor.u32 %v3812_v23, %v2856_v25 }
  0x39   :  { %1027 = vmatpush.bf16.msrb.mxu1 %v3147_v44  ;;  %993 = vmatmul.bf16.vlgmr.msra.gmra.mxu2 %v4252_v53  ;;  %v3768_v30 = vld [vmem:[#allocation5 + $0xac] sm:$0xf0]  ;;  %v2862_v31 = vld [vmem:[#allocation5 + $0x218] sm:$0xf]  ;;  %v3051_v34 = vor.u32 %v3860_v26, %v3048_v27  ;;  %v3806_v35 = vld [vmem:[#allocation5 + $0x1e4] sm:$0xf] }
  0x3a   :  { %1041 = vmatpush.bf16.msrb.mxu2 %v2767_v48  ;;  %1055 = vmatpush.bf16.msrb.mxu3 %v2959_v54  ;;  %v3816_v32 = vld [vmem:[#allocation5 + $0x22c] sm:$0xf0]  ;;  %v2671_v36 = vor.u32 %v3768_v30, %v2670_v29  ;;  %v2832_v37 = vld [vmem:[#allocation5 + $0x1f8] sm:$0xf0]  ;;  %v3854_v38 = vld [vmem:[#allocation5 + $0x364] sm:$0xf] }
  0x3b   :  { %1007 = vmatmul.bf16.vlgmr.msra.gmra.mxu3 %v4254_v57  ;;  %v3024_v39 = vld [vmem:[#allocation5 + $0x378] sm:$0xf0]  ;;  %v2863_v40 = vor.u32 %v3816_v32, %v2862_v31  ;;  %v2646_v41 = vld [vmem:[#allocation5 + $0x68] sm:$0xf]  ;;  %v3762_v42 = vld [vmem:[#allocation5 + $0x7c] sm:$0xf0]  ;;  %v2835_v45 = vor.u32 %v3806_v35, %v2832_v37 }
  0x3c   :  { %1014 = vmatpush.bf16.msrb.mxu0 %v2931_v61  ;;  %v2838_v43 = vld [vmem:[#allocation5 + $0x1e8] sm:$0xf]  ;;  %v3810_v44 = vld [vmem:[#allocation5 + $0x1fc] sm:$0xf0]  ;;  %v3027_v46 = vor.u32 %v3854_v38, %v3024_v39  ;;  %v3800_v47 = vld [vmem:[#allocation5 + $0x1b4] sm:$0xf]  ;;  %v2647_v48 = vor.u32 %v3762_v42, %v2646_v41 }
  0x3d   :  { %1028 = vmatpush.bf16.msrb.mxu1 %v3123_v62  ;;  %v2808_v49 = vld [vmem:[#allocation5 + $0x1c8] sm:$0xf0]  ;;  %v3848_v50 = vld [vmem:[#allocation5 + $0x334] sm:$0xf]  ;;  %v2839_v52 = vor.u32 %v3810_v44, %v2838_v43  ;;  %v2622_v54 = vld [vmem:[#allocation5 + $0x38] sm:$0xf] }
  0x3e   :  { %1042 = vmatpush.bf16.msrb.mxu2 %v2743_v0  ;;  %1056 = vmatpush.bf16.msrb.mxu3 %v2935_v4  ;;  %v3000_v51 = vld [vmem:[#allocation5 + $0x348] sm:$0xf0]  ;;  %v3756_v55 = vld [vmem:[#allocation5 + $0x4c] sm:$0xf0]  ;;  %v2814_v56 = vld [vmem:[#allocation5 + $0x1b8] sm:$0xf]  ;;  %v2811_v60 = vor.u32 %v3800_v47, %v2808_v49 }
  0x3f   :  { %v3804_v59 = vld [vmem:[#allocation5 + $0x1cc] sm:$0xf0]  ;;  %v3003_v61 = vor.u32 %v3848_v50, %v3000_v51  ;;  %v3794_v62 = vld [vmem:[#allocation5 + $0x184] sm:$0xf]  ;;  %v2784_v63 = vld [vmem:[#allocation5 + $0x198] sm:$0xf0]  ;;  %v2623_v1 = vor.u32 %v3756_v55, %v2622_v54 }
  0x40   :  { %1015 = vmatpush.bf16.msrb.mxu0 %v2907_v9  ;;  %v3842_v0 = vld [vmem:[#allocation5 + $0x304] sm:$0xf]  ;;  %v2976_v2 = vld [vmem:[#allocation5 + $0x318] sm:$0xf0]  ;;  %v2598_v3 = vld [vmem:[#allocation5 + $0x8] sm:$0xf]  ;;  %v2815_v5 = vor.u32 %v3804_v59, %v2814_v56 }
  0x41   :  { %1029 = vmatpush.bf16.msrb.mxu1 %v3099_v10  ;;  %v3750_v4 = vld [vmem:[#allocation5 + $0x1c] sm:$0xf0]  ;;  %v3150_v6 = vld [vmem:[#allocation5 + $0x458] sm:$0xf]  ;;  %v3888_v7 = vld [vmem:[#allocation5 + $0x46c] sm:$0xf0]  ;;  %v2979_v13 = vor.u32 %v3842_v0, %v2976_v2 }
  0x42   :  { %1043 = vmatpush.bf16.msrb.mxu2 %v2719_v12  ;;  %1057 = vmatpush.bf16.msrb.mxu3 %v2911_v16  ;;  %v3789_v8 = vld [vmem:[#allocation5 + $0x15c] sm:$0xf]  ;;  %v2768_v9 = vld [vmem:[#allocation5 + $0x170] sm:$0xf0]  ;;  %v2787_v12 = vor.u32 %v3794_v62, %v2784_v63  ;;  %v2790_v14 = vld [vmem:[#allocation5 + $0x188] sm:$0xf]  ;;  %v2599_v16 = vor.u32 %v3750_v4, %v2598_v3  ;;  %v3151_v17 = vor.u32 %v3888_v7, %v3150_v6 }
  0x43   :  { %v3837_v10 = vld [vmem:[#allocation5 + $0x2dc] sm:$0xf]  ;;  %v2960_v11 = vld [vmem:[#allocation5 + $0x2f0] sm:$0xf0]  ;;  %v3798_v15 = vld [vmem:[#allocation5 + $0x19c] sm:$0xf0]  ;;  %v2771_v20 = vor.u32 %v3789_v8, %v2768_v9 }
  0x44   :  { %1016 = vmatpush.bf16.msrb.mxu0 %v2883_v21  ;;  %v3885_v18 = vld [vmem:[#allocation5 + $0x45c] sm:$0xf]  ;;  %v3152_v19 = vld [vmem:[#allocation5 + $0x470] sm:$0xf0]  ;;  %v2963_v21 = vor.u32 %v3837_v10, %v2960_v11  ;;  %v3882_v23 = vld [vmem:[#allocation5 + $0x43c] sm:$0xf0]  ;;  %v2791_v25 = vor.u32 %v3798_v15, %v2790_v14 }
  0x45   :  { %1030 = vmatpush.bf16.msrb.mxu1 %v3075_v22  ;;  %v3126_v22 = vld [vmem:[#allocation5 + $0x428] sm:$0xf]  ;;  %v2744_v26 = vld [vmem:[#allocation5 + $0x140] sm:$0xf0]  ;;  %v3831_v27 = vld [vmem:[#allocation5 + $0x2ac] sm:$0xf]  ;;  %v3155_v29 = vor.u32 %v3885_v18, %v3152_v19 }
  0x46   :  { %1044 = vmatpush.bf16.msrb.mxu2 %v2695_v24  ;;  %1058 = vmatpush.bf16.msrb.mxu3 %v2887_v28  ;;  %v3783_v24 = vld [vmem:[#allocation5 + $0x12c] sm:$0xf]  ;;  %v2936_v28 = vld [vmem:[#allocation5 + $0x2c0] sm:$0xf0]  ;;  %v3127_v30 = vor.u32 %v3882_v23, %v3126_v22  ;;  %v3102_v35 = vld [vmem:[#allocation5 + $0x3f8] sm:$0xf] }
  0x47   :  { %v3879_v31 = vld [vmem:[#allocation5 + $0x42c] sm:$0xf]  ;;  %v3128_v32 = vld [vmem:[#allocation5 + $0x440] sm:$0xf0]  ;;  %v3777_v37 = vld [vmem:[#allocation5 + $0xfc] sm:$0xf] }
  0x48   :  { %1017 = vmatpush.bf16.msrb.mxu0 %v2859_v33  ;;  %v2747_v33 = vor.u32 %v3783_v24, %v2744_v26  ;;  %v2720_v38 = vld [vmem:[#allocation5 + $0x110] sm:$0xf0]  ;;  %v3825_v39 = vld [vmem:[#allocation5 + $0x27c] sm:$0xf]  ;;  %v3131_v41 = vor.u32 %v3879_v31, %v3128_v32  ;;  %v3078_v47 = vld [vmem:[#allocation5 + $0x3c8] sm:$0xf] }
  0x49   :  { %1031 = vmatpush.bf16.msrb.mxu1 %v3051_v34  ;;  %v2939_v34 = vor.u32 %v3831_v27, %v2936_v28  ;;  %v3873_v43 = vld [vmem:[#allocation5 + $0x3fc] sm:$0xf]  ;;  %v3104_v44 = vld [vmem:[#allocation5 + $0x410] sm:$0xf0]  ;;  %v3771_v49 = vld [vmem:[#allocation5 + $0xcc] sm:$0xf] }
  0x4a   :  { %1045 = vmatpush.bf16.msrb.mxu2 %v2671_v36  ;;  %1059 = vmatpush.bf16.msrb.mxu3 %v2863_v40  ;;  %v3876_v36 = vld [vmem:[#allocation5 + $0x40c] sm:$0xf0]  ;;  %v2912_v40 = vld [vmem:[#allocation5 + $0x290] sm:$0xf0]  ;;  %v2696_v50 = vld [vmem:[#allocation5 + $0xe0] sm:$0xf0]  ;;  %v3107_v54 = vor.u32 %v3873_v43, %v3104_v44 }
  0x4b   :  { %v3103_v42 = vor.u32 %v3876_v36, %v3102_v35  ;;  %v3819_v51 = vld [vmem:[#allocation5 + $0x24c] sm:$0xf]  ;;  %v3080_v59 = vld [vmem:[#allocation5 + $0x3e0] sm:$0xf0]  ;;  %v3054_v62 = vld [vmem:[#allocation5 + $0x398] sm:$0xf] }
  0x4c   :  { %1018 = vmatpush.bf16.msrb.mxu0 %v2835_v45  ;;  %v2723_v45 = vor.u32 %v3777_v37, %v2720_v38  ;;  %v3867_v56 = vld [vmem:[#allocation5 + $0x3cc] sm:$0xf]  ;;  %v3864_v63 = vld [vmem:[#allocation5 + $0x3ac] sm:$0xf0]  ;;  %v3765_v0 = vld [vmem:[#allocation5 + $0x9c] sm:$0xf] }
  0x4d   :  { %1032 = vmatpush.bf16.msrb.mxu1 %v3027_v46  ;;  %v2915_v46 = vor.u32 %v3825_v39, %v2912_v40  ;;  %v3813_v2 = vld [vmem:[#allocation5 + $0x21c] sm:$0xf]  ;;  %v2864_v3 = vld [vmem:[#allocation5 + $0x230] sm:$0xf0]  ;;  %v3083_v4 = vor.u32 %v3867_v56, %v3080_v59  ;;  %v3030_v10 = vld [vmem:[#allocation5 + $0x368] sm:$0xf] }
  0x4e   :  { %1046 = vmatpush.bf16.msrb.mxu2 %v2647_v48  ;;  %1060 = vmatpush.bf16.msrb.mxu3 %v2839_v52  ;;  %v3870_v48 = vld [vmem:[#allocation5 + $0x3dc] sm:$0xf0]  ;;  %v2888_v52 = vld [vmem:[#allocation5 + $0x260] sm:$0xf0]  ;;  %v3861_v6 = vld [vmem:[#allocation5 + $0x39c] sm:$0xf]  ;;  %v2867_v9 = vor.u32 %v3813_v2, %v2864_v3 }
  0x4f   :  { %v3079_v55 = vor.u32 %v3870_v48, %v3078_v47  ;;  %v3056_v7 = vld [vmem:[#allocation5 + $0x3b0] sm:$0xf0]  ;;  %v3858_v11 = vld [vmem:[#allocation5 + $0x37c] sm:$0xf0]  ;;  %v3807_v14 = vld [vmem:[#allocation5 + $0x1ec] sm:$0xf] }
  0x50   :  { %1019 = vmatpush.bf16.msrb.mxu0 %v2811_v60  ;;  %v2699_v60 = vor.u32 %v3771_v49, %v2696_v50  ;;  %v2840_v15 = vld [vmem:[#allocation5 + $0x200] sm:$0xf0]  ;;  %v3855_v18 = vld [vmem:[#allocation5 + $0x36c] sm:$0xf]  ;;  %v3006_v22 = vld [vmem:[#allocation5 + $0x338] sm:$0xf] }
  0x51   :  { %1033 = vmatpush.bf16.msrb.mxu1 %v3003_v61  ;;  %v2891_v61 = vor.u32 %v3819_v51, %v2888_v52  ;;  %v3032_v19 = vld [vmem:[#allocation5 + $0x380] sm:$0xf0]  ;;  %v3852_v23 = vld [vmem:[#allocation5 + $0x34c] sm:$0xf0]  ;;  %v3753_v24 = vld [vmem:[#allocation5 + $0x3c] sm:$0xf] }
  0x52   :  { %1047 = vmatpush.bf16.msrb.mxu2 %v2623_v1  ;;  %1061 = vmatpush.bf16.msrb.mxu3 %v2815_v5  ;;  %v2672_v1 = vld [vmem:[#allocation5 + $0xb0] sm:$0xf0]  ;;  %v3055_v5 = vor.u32 %v3864_v63, %v3054_v62  ;;  %v3801_v26 = vld [vmem:[#allocation5 + $0x1bc] sm:$0xf]  ;;  %v3035_v28 = vor.u32 %v3855_v18, %v3032_v19  ;;  %v2982_v32 = vld [vmem:[#allocation5 + $0x308] sm:$0xf] }
  0x53   :  { %v2675_v8 = vor.u32 %v3765_v0, %v2672_v1  ;;  %v2816_v27 = vld [vmem:[#allocation5 + $0x1d0] sm:$0xf0]  ;;  %v3747_v36 = vld [vmem:[#allocation5 + $0xc] sm:$0xf]  ;;  %v2600_v37 = vld [vmem:[#allocation5 + $0x20] sm:$0xf0] }
  0x54   :  { %1020 = vmatpush.bf16.msrb.mxu0 %v2787_v12  ;;  %v3759_v12 = vld [vmem:[#allocation5 + $0x6c] sm:$0xf]  ;;  %v3008_v31 = vld [vmem:[#allocation5 + $0x350] sm:$0xf0]  ;;  %v2819_v35 = vor.u32 %v3801_v26, %v2816_v27  ;;  %v2792_v39 = vld [vmem:[#allocation5 + $0x1a0] sm:$0xf0]  ;;  %v2603_v50 = vor.u32 %v3747_v36, %v2600_v37 }
  0x55   :  { %1034 = vmatpush.bf16.msrb.mxu1 %v2979_v13  ;;  %v2648_v13 = vld [vmem:[#allocation5 + $0x80] sm:$0xf0]  ;;  %v3795_v38 = vld [vmem:[#allocation5 + $0x18c] sm:$0xf]  ;;  %v2774_v40 = vld [vmem:[#allocation5 + $0x160] sm:$0xf] }
  0x56   :  { %1048 = vmatpush.bf16.msrb.mxu2 %v2599_v16  ;;  %1062 = vmatpush.bf16.msrb.mxu3 %v2791_v25  ;;  %v3059_v16 = vor.u32 %v3861_v6, %v3056_v7  ;;  %v2624_v25 = vld [vmem:[#allocation5 + $0x50] sm:$0xf0]  ;;  %v2966_v43 = vld [vmem:[#allocation5 + $0x2e0] sm:$0xf]  ;;  %v3841_v44 = vld [vmem:[#allocation5 + $0x2f4] sm:$0xf0]  ;;  %v2795_v51 = vor.u32 %v3795_v38, %v2792_v39 }
  0x57   :  { %1021 = vmatmul.bf16.vlgmr.msrb.gmra.mxu0 %v4256_v58  ;;  %v3889_v47 = vld [vmem:[#allocation5 + $0x474] sm:$0xf0]  ;;  %v3843_v48 = vld [vmem:[#allocation5 + $0x30c] sm:$0xf]  ;;  %v2984_v49 = vld [vmem:[#allocation5 + $0x320] sm:$0xf0] }
  0x58   :  { %1069 = vmatpush.bf16.msra.mxu0 %v3151_v17  ;;  %1035 = vmatmul.bf16.vlgmr.msrb.gmra.mxu1 %v4252_v53  ;;  %v3031_v17 = vor.u32 %v3858_v11, %v3030_v10  ;;  %v2776_v56 = vld [vmem:[#allocation5 + $0x178] sm:$0xf0]  ;;  %v3787_v62 = vld [vmem:[#allocation5 + $0x144] sm:$0xf0]  ;;  %v2942_v63 = vld [vmem:[#allocation5 + $0x2b0] sm:$0xf] }
  0x59   :  { %1083 = vmatpush.bf16.msra.mxu1 %v2771_v20  ;;  %1049 = vmatmul.bf16.vlgmr.msrb.gmra.mxu2 %v4254_v57  ;;  %v2651_v20 = vor.u32 %v3759_v12, %v2648_v13  ;;  %v3835_v0 = vld [vmem:[#allocation5 + $0x2c4] sm:$0xf0]  ;;  %v3134_v1 = vld [vmem:[#allocation5 + $0x430] sm:$0xf]  ;;  %v2752_v6 = vld [vmem:[#allocation5 + $0x148] sm:$0xf0] }
  0x5a   :  { %1097 = vmatpush.bf16.msra.mxu2 %v2963_v21  ;;  %1111 = vmatpush.bf16.msra.mxu3 %v3155_v29  ;;  %v2843_v21 = vor.u32 %v3807_v14, %v2840_v15  ;;  %v3849_v29 = vld [vmem:[#allocation5 + $0x33c] sm:$0xf]  ;;  %v3883_v2 = vld [vmem:[#allocation5 + $0x444] sm:$0xf0]  ;;  %v2943_v7 = vor.u32 %v3835_v0, %v2942_v63  ;;  %v3781_v10 = vld [vmem:[#allocation5 + $0x114] sm:$0xf0] }
  0x5b   :  { %1063 = vmatmul.bf16.vlgmr.msrb.gmra.mxu3 %v4256_v58  ;;  %v2918_v11 = vld [vmem:[#allocation5 + $0x280] sm:$0xf]  ;;  %v3829_v12 = vld [vmem:[#allocation5 + $0x294] sm:$0xf0]  ;;  %v2728_v18 = vld [vmem:[#allocation5 + $0x118] sm:$0xf0] }
  0x5c   :  { %1070 = vmatpush.bf16.msra.mxu0 %v3127_v30  ;;  %v3007_v30 = vor.u32 %v3852_v23, %v3006_v22  ;;  %v3110_v13 = vld [vmem:[#allocation5 + $0x400] sm:$0xf]  ;;  %v3877_v14 = vld [vmem:[#allocation5 + $0x414] sm:$0xf0]  ;;  %v2919_v19 = vor.u32 %v3829_v12, %v2918_v11  ;;  %v3775_v22 = vld [vmem:[#allocation5 + $0xe4] sm:$0xf0] }
  0x5d   :  { %1084 = vmatpush.bf16.msra.mxu1 %v2747_v33  ;;  %v3846_v33 = vld [vmem:[#allocation5 + $0x31c] sm:$0xf0]  ;;  %v2894_v23 = vld [vmem:[#allocation5 + $0x250] sm:$0xf]  ;;  %v3871_v26 = vld [vmem:[#allocation5 + $0x3e4] sm:$0xf0] }
  0x5e   :  { %1098 = vmatpush.bf16.msra.mxu2 %v2939_v34  ;;  %1112 = vmatpush.bf16.msra.mxu3 %v3131_v41  ;;  %v2627_v34 = vor.u32 %v3753_v24, %v2624_v25  ;;  %v3793_v41 = vld [vmem:[#allocation5 + $0x174] sm:$0xf0]  ;;  %v3823_v24 = vld [vmem:[#allocation5 + $0x264] sm:$0xf0]  ;;  %v3086_v25 = vld [vmem:[#allocation5 + $0x3d0] sm:$0xf] }
  0x5f   :  { %v2775_v52 = vor.u32 %v3793_v41, %v2774_v40  ;;  %v3817_v36 = vld [vmem:[#allocation5 + $0x234] sm:$0xf0]  ;;  %v3062_v37 = vld [vmem:[#allocation5 + $0x3a0] sm:$0xf]  ;;  %v3766_v41 = vld [vmem:[#allocation5 + $0xa4] sm:$0xf] }
  0x60   :  { %1071 = vmatpush.bf16.msra.mxu0 %v3103_v42  ;;  %v3011_v42 = vor.u32 %v3849_v29, %v3008_v31  ;;  %v3772_v29 = vld [vmem:[#allocation5 + $0xd4] sm:$0xf]  ;;  %v2895_v31 = vor.u32 %v3823_v24, %v2894_v23  ;;  %v3865_v38 = vld [vmem:[#allocation5 + $0x3b4] sm:$0xf0]  ;;  %v3014_v0 = vld [vmem:[#allocation5 + $0x340] sm:$0xf] }
  0x61   :  { %1085 = vmatpush.bf16.msra.mxu1 %v2723_v45  ;;  %v3158_v45 = vld [vmem:[#allocation5 + $0x460] sm:$0xf]  ;;  %v3805_v63 = vld [vmem:[#allocation5 + $0x1d4] sm:$0xf0]  ;;  %v3799_v11 = vld [vmem:[#allocation5 + $0x1a4] sm:$0xf0] }
  0x62   :  { %1099 = vmatpush.bf16.msra.mxu2 %v2915_v46  ;;  %1113 = vmatpush.bf16.msra.mxu3 %v3107_v54  ;;  %v2983_v46 = vor.u32 %v3846_v33, %v2982_v32  ;;  %v2967_v54 = vor.u32 %v3841_v44, %v2966_v43  ;;  %v3159_v59 = vor.u32 %v3889_v47, %v3158_v45  ;;  %v2678_v33 = vld [vmem:[#allocation5 + $0xa0] sm:$0xf]  ;;  %v2654_v45 = vld [vmem:[#allocation5 + $0x70] sm:$0xf] }
  0x63   :  { %v3087_v32 = vor.u32 %v3871_v26, %v3086_v25  ;;  %v3063_v44 = vor.u32 %v3865_v38, %v3062_v37  ;;  %v2846_v47 = vld [vmem:[#allocation5 + $0x1f0] sm:$0xf]  ;;  %v3832_v26 = vld [vmem:[#allocation5 + $0x2b4] sm:$0xf] }
  0x64   :  { %1072 = vmatpush.bf16.msra.mxu0 %v3079_v55  ;;  %v3790_v55 = vld [vmem:[#allocation5 + $0x164] sm:$0xf]  ;;  %v2990_v12 = vld [vmem:[#allocation5 + $0x310] sm:$0xf] }
  0x65   :  { %1086 = vmatpush.bf16.msra.mxu1 %v2699_v60  ;;  %v2987_v60 = vor.u32 %v3843_v48, %v2984_v49  ;;  %v2779_v3 = vor.u32 %v3790_v55, %v2776_v56  ;;  %v3811_v48 = vld [vmem:[#allocation5 + $0x204] sm:$0xf0]  ;;  %v3038_v49 = vld [vmem:[#allocation5 + $0x370] sm:$0xf]  ;;  %v2656_v55 = vld [vmem:[#allocation5 + $0x88] sm:$0xf0] }
  0x66   :  { %1100 = vmatpush.bf16.msra.mxu2 %v2891_v61  ;;  %1114 = vmatpush.bf16.msra.mxu3 %v3083_v4  ;;  %v2750_v61 = vld [vmem:[#allocation5 + $0x130] sm:$0xf]  ;;  %v2847_v56 = vor.u32 %v3811_v48, %v2846_v47  ;;  %v3862_v47 = vld [vmem:[#allocation5 + $0x3a4] sm:$0xf]  ;;  %v3064_v48 = vld [vmem:[#allocation5 + $0x3b8] sm:$0xf0] }
  0x67   :  { %v2751_v4 = vor.u32 %v3787_v62, %v2750_v61  ;;  %v3757_v61 = vld [vmem:[#allocation5 + $0x54] sm:$0xf0]  ;;  %v2822_v62 = vld [vmem:[#allocation5 + $0x1c0] sm:$0xf] }
  0x68   :  { %1073 = vmatpush.bf16.msra.mxu0 %v3055_v5  ;;  %v3784_v5 = vld [vmem:[#allocation5 + $0x134] sm:$0xf] }
  0x69   :  { %1087 = vmatpush.bf16.msra.mxu1 %v2675_v8  ;;  %v3135_v8 = vor.u32 %v3883_v2, %v3134_v1  ;;  %v2755_v15 = vor.u32 %v3784_v5, %v2752_v6  ;;  %v3853_v1 = vld [vmem:[#allocation5 + $0x354] sm:$0xf0]  ;;  %v3754_v5 = vld [vmem:[#allocation5 + $0x44] sm:$0xf]  ;;  %v2632_v6 = vld [vmem:[#allocation5 + $0x58] sm:$0xf0] }
  0x6a   :  { %1101 = vmatpush.bf16.msra.mxu2 %v2867_v9  ;;  %1115 = vmatpush.bf16.msra.mxu3 %v3059_v16  ;;  %v2726_v9 = vld [vmem:[#allocation5 + $0x100] sm:$0xf] }
  0x6b   :  { %v2727_v16 = vor.u32 %v3781_v10, %v2726_v9  ;;  %v3751_v9 = vld [vmem:[#allocation5 + $0x24] sm:$0xf0]  ;;  %v2798_v10 = vld [vmem:[#allocation5 + $0x190] sm:$0xf] }
  0x6c   :  { %1074 = vmatpush.bf16.msra.mxu0 %v3031_v17  ;;  %v3778_v17 = vld [vmem:[#allocation5 + $0x104] sm:$0xf] }
  0x6d   :  { %1088 = vmatpush.bf16.msra.mxu1 %v2651_v20  ;;  %v3111_v20 = vor.u32 %v3877_v14, %v3110_v13  ;;  %v2731_v27 = vor.u32 %v3778_v17, %v2728_v18  ;;  %v3847_v13 = vld [vmem:[#allocation5 + $0x324] sm:$0xf0]  ;;  %v3838_v14 = vld [vmem:[#allocation5 + $0x2e4] sm:$0xf]  ;;  %v3160_v17 = vld [vmem:[#allocation5 + $0x478] sm:$0xf0]  ;;  %v2635_v18 = vor.u32 %v3754_v5, %v2632_v6 }
  0x6e   :  { %1102 = vmatpush.bf16.msra.mxu2 %v2843_v21  ;;  %1116 = vmatpush.bf16.msra.mxu3 %v3035_v28  ;;  %v2702_v21 = vld [vmem:[#allocation5 + $0xd0] sm:$0xf]  ;;  %v2991_v23 = vor.u32 %v3847_v13, %v2990_v12 }
  0x6f   :  { %v2703_v28 = vor.u32 %v3775_v22, %v2702_v21  ;;  %v2608_v21 = vld [vmem:[#allocation5 + $0x28] sm:$0xf0]  ;;  %v2799_v22 = vor.u32 %v3799_v11, %v2798_v10  ;;  %v3256_v10 = vld [vmem:[#allocation7 + $0xa8] sm:$0xf]  ;;  %v3912_v11 = vld [vmem:[#allocation7 + $0xb0] sm:$0xf0] }
  0x70   :  { %1075 = vmatpush.bf16.msra.mxu0 %v3007_v30  ;;  %v2704_v30 = vld [vmem:[#allocation5 + $0xe8] sm:$0xf0]  ;;  %v3257_v12 = vor.u32 %v3912_v11, %v3256_v10  ;;  %v3244_v13 = vld [vmem:[#allocation7 + $0x90] sm:$0xf] }
  0x71   :  { %1089 = vmatpush.bf16.msra.mxu1 %v2627_v34  ;;  %v3769_v34 = vld [vmem:[#allocation5 + $0xb4] sm:$0xf0]  ;;  %v2707_v39 = vor.u32 %v3772_v29, %v2704_v30  ;;  %v3136_v29 = vld [vmem:[#allocation5 + $0x448] sm:$0xf0] }
  0x72   :  { %1103 = vmatpush.bf16.msra.mxu2 %v2819_v35  ;;  %1117 = vmatpush.bf16.msra.mxu3 %v3011_v42  ;;  %v2870_v35 = vld [vmem:[#allocation5 + $0x220] sm:$0xf]  ;;  %v2679_v40 = vor.u32 %v3769_v34, %v2678_v33  ;;  %v2680_v42 = vld [vmem:[#allocation5 + $0xb8] sm:$0xf0]  ;;  %v3826_v33 = vld [vmem:[#allocation5 + $0x284] sm:$0xf] }
  0x73   :  { %v2871_v43 = vor.u32 %v3817_v36, %v2870_v35  ;;  %v2920_v34 = vld [vmem:[#allocation5 + $0x298] sm:$0xf0]  ;;  %v3874_v35 = vld [vmem:[#allocation5 + $0x404] sm:$0xf]  ;;  %v3935_v11 = vld [vmem:[#allocation7 + $0x16c] sm:$0xf] }
  0x74   :  { %1076 = vmatpush.bf16.msra.mxu0 %v2983_v46  ;;  %v3763_v46 = vld [vmem:[#allocation5 + $0x84] sm:$0xf0]  ;;  %v3112_v36 = vld [vmem:[#allocation5 + $0x418] sm:$0xf0]  ;;  %v2923_v37 = vor.u32 %v3826_v33, %v2920_v34 }
  0x75   :  { %1090 = vmatpush.bf16.msra.mxu1 %v2603_v50  ;;  %v3859_v50 = vld [vmem:[#allocation5 + $0x384] sm:$0xf0]  ;;  %v3115_v38 = vor.u32 %v3874_v35, %v3112_v36 }
  0x76   :  { %1104 = vmatpush.bf16.msra.mxu2 %v2795_v51  ;;  %1118 = vmatpush.bf16.msra.mxu3 %v2987_v60  ;;  %v2683_v51 = vor.u32 %v3766_v41, %v2680_v42  ;;  %v2630_v60 = vld [vmem:[#allocation5 + $0x40] sm:$0xf]  ;;  %v3868_v41 = vld [vmem:[#allocation5 + $0x3d4] sm:$0xf]  ;;  %v3088_v42 = vld [vmem:[#allocation5 + $0x3e8] sm:$0xf0] }
  0x77   :  { %1077 = vmatmul.bf16.vlgmr.msra.gmra.mxu0 %v4252_v53  ;;  %v3234_v34 = vld [vmem:[#allocation7 + $0x84] sm:$0xf0] }
  0x78   :  { %1125 = vmatpush.bf16.msrb.mxu0 %v2775_v52  ;;  %1091 = vmatmul.bf16.vlgmr.msra.gmra.mxu1 %v4254_v57  ;;  %v2655_v52 = vor.u32 %v3763_v46, %v2654_v45  ;;  %v3814_v45 = vld [vmem:[#allocation5 + $0x224] sm:$0xf]  ;;  %v2872_v46 = vld [vmem:[#allocation5 + $0x238] sm:$0xf0] }
  0x79   :  { %1139 = vmatpush.bf16.msrb.mxu1 %v2967_v54  ;;  %1105 = vmatmul.bf16.vlgmr.msra.gmra.mxu2 %v4256_v58  ;;  %v3760_v54 = vld [vmem:[#allocation5 + $0x74] sm:$0xf] }
  0x7a   :  { %1153 = vmatpush.bf16.msrb.mxu2 %v3159_v59  ;;  %1167 = vmatpush.bf16.msrb.mxu3 %v2779_v3  ;;  %v3039_v59 = vor.u32 %v3859_v50, %v3038_v49  ;;  %v2659_v2 = vor.u32 %v3760_v54, %v2656_v55  ;;  %v2631_v3 = vor.u32 %v3757_v61, %v2630_v60  ;;  %v3856_v54 = vld [vmem:[#allocation5 + $0x374] sm:$0xf]  ;;  %v3040_v55 = vld [vmem:[#allocation5 + $0x388] sm:$0xf0]  ;;  %v2824_v60 = vld [vmem:[#allocation5 + $0x1d8] sm:$0xf0] }
  0x7b   :  { %1119 = vmatmul.bf16.vlgmr.msra.gmra.mxu3 %v4252_v53  ;;  %v2875_v49 = vor.u32 %v3814_v45, %v2872_v46  ;;  %v3067_v50 = vor.u32 %v3862_v47, %v3064_v48  ;;  %v3850_v61 = vld [vmem:[#allocation5 + $0x344] sm:$0xf]  ;;  %v3196_v45 = vld [vmem:[#allocation7 + $0x30] sm:$0xf]  ;;  %v3897_v46 = vld [vmem:[#allocation7 + $0x38] sm:$0xf0] }
  0x7c   :  { %1126 = vmatpush.bf16.msrb.mxu0 %v2751_v4  ;;  %v2606_v4 = vld [vmem:[#allocation5 + $0x10] sm:$0xf]  ;;  %v3899_v47 = vld [vmem:[#allocation7 + $0x4c] sm:$0xf]  ;;  %v3197_v48 = vor.u32 %v3897_v46, %v3196_v45  ;;  %v3316_v46 = vld [vmem:[#allocation7 + $0x120] sm:$0xf] }
  0x7d   :  { %1140 = vmatpush.bf16.msrb.mxu1 %v2943_v7  ;;  %v2823_v7 = vor.u32 %v3805_v63, %v2822_v62  ;;  %v3016_v62 = vld [vmem:[#allocation5 + $0x358] sm:$0xf0] }
  0x7e   :  { %1154 = vmatpush.bf16.msrb.mxu2 %v3135_v8  ;;  %1168 = vmatpush.bf16.msrb.mxu3 %v2755_v15  ;;  %v3015_v8 = vor.u32 %v3853_v1, %v3014_v0  ;;  %v2968_v15 = vld [vmem:[#allocation5 + $0x2f8] sm:$0xf0]  ;;  %v3019_v0 = vor.u32 %v3850_v61, %v3016_v62  ;;  %v3796_v1 = vld [vmem:[#allocation5 + $0x194] sm:$0xf] }
  0x7f   :  { %v2971_v24 = vor.u32 %v3838_v14, %v2968_v15  ;;  %v3909_v14 = vld [vmem:[#allocation7 + $0x98] sm:$0xf0]  ;;  %v3911_v15 = vld [vmem:[#allocation7 + $0xac] sm:$0xf] }
  0x80   :  { %1127 = vmatpush.bf16.msrb.mxu0 %v2727_v16  ;;  %v3886_v16 = vld [vmem:[#allocation5 + $0x464] sm:$0xf] }
  0x81   :  { %1141 = vmatpush.bf16.msrb.mxu1 %v2919_v19  ;;  %v2607_v19 = vor.u32 %v3751_v9, %v2606_v4  ;;  %v3163_v25 = vor.u32 %v3886_v16, %v3160_v17  ;;  %v2992_v4 = vld [vmem:[#allocation5 + $0x328] sm:$0xf0]  ;;  %v3245_v16 = vor.u32 %v3909_v14, %v3244_v13  ;;  %v3258_v17 = vld [vmem:[#allocation7 + $0xb4] sm:$0xf0] }
  0x82   :  { %1155 = vmatpush.bf16.msrb.mxu2 %v3111_v20  ;;  %1169 = vmatpush.bf16.msrb.mxu3 %v2731_v27  ;;  %v3748_v20 = vld [vmem:[#allocation5 + $0x14] sm:$0xf]  ;;  %v2944_v27 = vld [vmem:[#allocation5 + $0x2c8] sm:$0xf0] }
  0x83   :  { %v2611_v30 = vor.u32 %v3748_v20, %v2608_v21  ;;  %v3261_v21 = vor.u32 %v3911_v15, %v3258_v17  ;;  %v3890_v15 = vld [vmem:[#allocation7 + $0x4] sm:$0xf] }
  0x84   :  { %1128 = vmatpush.bf16.msrb.mxu0 %v2703_v28  ;;  %v3880_v28 = vld [vmem:[#allocation5 + $0x434] sm:$0xf] }
  0x85   :  { %1142 = vmatpush.bf16.msrb.mxu1 %v2895_v31  ;;  %v2947_v31 = vor.u32 %v3832_v26, %v2944_v27 }
  0x86   :  { %1156 = vmatpush.bf16.msrb.mxu2 %v3087_v32  ;;  %1170 = vmatpush.bf16.msrb.mxu3 %v2707_v39  ;;  %v3139_v32 = vor.u32 %v3880_v28, %v3136_v29  ;;  %v3820_v39 = vld [vmem:[#allocation5 + $0x254] sm:$0xf]  ;;  %v3220_v29 = vld [vmem:[#allocation7 + $0x60] sm:$0xf] }
  0x88   :  { %1129 = vmatpush.bf16.msrb.mxu0 %v2679_v40  ;;  %v2896_v40 = vld [vmem:[#allocation5 + $0x268] sm:$0xf0] }
  0x89   :  { %1143 = vmatpush.bf16.msrb.mxu1 %v2871_v43  ;;  %v2899_v43 = vor.u32 %v3820_v39, %v2896_v40  ;;  %v3902_v39 = vld [vmem:[#allocation7 + $0x64] sm:$0xf] }
  0x8a   :  { %1157 = vmatpush.bf16.msrb.mxu2 %v3063_v44  ;;  %1171 = vmatpush.bf16.msrb.mxu3 %v2683_v51  ;;  %v3091_v44 = vor.u32 %v3868_v41, %v3088_v42  ;;  %v3808_v51 = vld [vmem:[#allocation5 + $0x1f4] sm:$0xf]  ;;  %v3222_v41 = vld [vmem:[#allocation7 + $0x6c] sm:$0xf0] }
  0x8c   :  { %1130 = vmatpush.bf16.msrb.mxu0 %v2655_v52  ;;  %v2848_v52 = vld [vmem:[#allocation5 + $0x208] sm:$0xf0] }
  0x8d   :  { %1144 = vmatpush.bf16.msrb.mxu1 %v2847_v56  ;;  %v2851_v56 = vor.u32 %v3808_v51, %v2848_v52 }
  0x8e   :  { %1158 = vmatpush.bf16.msrb.mxu2 %v3039_v59  ;;  %1172 = vmatpush.bf16.msrb.mxu3 %v2659_v2  ;;  %v3802_v59 = vld [vmem:[#allocation5 + $0x1c4] sm:$0xf]  ;;  %v2800_v2 = vld [vmem:[#allocation5 + $0x1a8] sm:$0xf0] }
  0x8f   :  { %v2827_v63 = vor.u32 %v3802_v59, %v2824_v60  ;;  %v2803_v5 = vor.u32 %v3796_v1, %v2800_v2  ;;  %v3198_v59 = vld [vmem:[#allocation7 + $0x3c] sm:$0xf0]  ;;  %v3891_v2 = vld [vmem:[#allocation7 + $0x8] sm:$0xf0] }
  0x90   :  { %1131 = vmatpush.bf16.msrb.mxu0 %v2631_v3  ;;  %v3844_v3 = vld [vmem:[#allocation5 + $0x314] sm:$0xf]  ;;  %v3172_v1 = vld [vmem:[#allocation7] sm:$0xf] }
  0x91   :  { %1145 = vmatpush.bf16.msrb.mxu1 %v2823_v7  ;;  %v2995_v6 = vor.u32 %v3844_v3, %v2992_v4  ;;  %v3893_v3 = vld [vmem:[#allocation7 + $0x1c] sm:$0xf]  ;;  %v3173_v4 = vor.u32 %v3891_v2, %v3172_v1  ;;  %v3304_v1 = vld [vmem:[#allocation7 + $0x108] sm:$0xf]  ;;  %v3924_v2 = vld [vmem:[#allocation7 + $0x110] sm:$0xf0] }
  0x92   :  { %1159 = vmatpush.bf16.msrb.mxu2 %v3015_v8  ;;  %1173 = vmatpush.bf16.msrb.mxu3 %v2635_v18 }
  0x94   :  { %1132 = vmatpush.bf16.msrb.mxu0 %v2607_v19 }
  0x95   :  { %1146 = vmatpush.bf16.msrb.mxu1 %v2799_v22  ;;  %v3908_v22 = vld [vmem:[#allocation7 + $0x94] sm:$0xf] }
  0x96   :  { %1160 = vmatpush.bf16.msrb.mxu2 %v2991_v23  ;;  %1174 = vmatpush.bf16.msrb.mxu3 %v2611_v30  ;;  %v3903_v30 = vld [vmem:[#allocation7 + $0x68] sm:$0xf0] }
  0x97   :  { %1133 = vmatmul.bf16.vlgmr.msrb.gmra.mxu0 %v4254_v57  ;;  %v3221_v33 = vor.u32 %v3903_v30, %v3220_v29 }
  0x98   :  { %1181 = vmatpush.bf16.msra.mxu0 %v2971_v24  ;;  %1147 = vmatmul.bf16.vlgmr.msrb.gmra.mxu1 %v4256_v58  ;;  %v3246_v24 = vld [vmem:[#allocation7 + $0x9c] sm:$0xf0] }
  0x99   :  { %1195 = vmatpush.bf16.msra.mxu1 %v3163_v25  ;;  %1161 = vmatmul.bf16.vlgmr.msrb.gmra.mxu2 %v4252_v53  ;;  %v3249_v28 = vor.u32 %v3908_v22, %v3246_v24  ;;  %v3360_v22 = vld [vmem:[#allocation7 + $0x170] sm:$0xf] }
  0x9a   :  { %1175 = vmatmul.bf16.vlgmr.msrb.gmra.mxu3 %v4254_v57  ;;  %v3043_v57 = vor.u32 %v3856_v54, %v3040_v55  ;;  %1818 = vmatpush.bf16.msra.mxu2 %v3257_v12  ;;  %v3184_v54 = vld [vmem:[#allocation7 + $0x18] sm:$0xf]  ;;  %v3894_v55 = vld [vmem:[#allocation7 + $0x20] sm:$0xf0] }
  0x9b   :  { %v3354_v12 = vld [vmem:[#allocation7 + $0x174] sm:$0xf0] }
  0x9c   :  { %1182 = vmatpush.bf16.msra.mxu0 %v2947_v31  ;;  %v3905_v31 = vld [vmem:[#allocation7 + $0x7c] sm:$0xf]  ;;  %v3357_v13 = vor.u32 %v3935_v11, %v3354_v12 }
  0x9d   :  { %1196 = vmatpush.bf16.msra.mxu1 %v3139_v32  ;;  %v3237_v36 = vor.u32 %v3905_v31, %v3234_v34  ;;  %v3930_v34 = vld [vmem:[#allocation7 + $0x140] sm:$0xf0] }
  0x9e   :  { %1819 = vmatpush.bf16.msra.mxu2 %v3245_v16  ;;  %v3174_v16 = vld [vmem:[#allocation7 + $0xc] sm:$0xf0] }
  0x9f   :  { %v3177_v17 = vor.u32 %v3890_v15, %v3174_v16 }
  0xa0   :  { %1183 = vmatpush.bf16.msra.mxu0 %v2923_v37  ;;  %v3208_v37 = vld [vmem:[#allocation7 + $0x48] sm:$0xf] }
  0xa1   :  { %1197 = vmatpush.bf16.msra.mxu1 %v3115_v38  ;;  %v3900_v38 = vld [vmem:[#allocation7 + $0x50] sm:$0xf0] }
  0xa4   :  { %1184 = vmatpush.bf16.msra.mxu0 %v2899_v43  ;;  %v3209_v43 = vor.u32 %v3900_v38, %v3208_v37  ;;  %v3929_v37 = vld [vmem:[#allocation7 + $0x13c] sm:$0xf]  ;;  %v3330_v38 = vld [vmem:[#allocation7 + $0x144] sm:$0xf0] }
  0xa5   :  { %1198 = vmatpush.bf16.msra.mxu1 %v3091_v44  ;;  %v3225_v44 = vor.u32 %v3902_v39, %v3222_v41  ;;  %v3348_v39 = vld [vmem:[#allocation7 + $0x158] sm:$0xf]  ;;  %v3333_v41 = vor.u32 %v3929_v37, %v3330_v38 }
  0xa8   :  { %1185 = vmatpush.bf16.msra.mxu0 %v2875_v49  ;;  %v3210_v49 = vld [vmem:[#allocation7 + $0x54] sm:$0xf0] }
  0xa9   :  { %1199 = vmatpush.bf16.msra.mxu1 %v3067_v50  ;;  %v3213_v51 = vor.u32 %v3899_v47, %v3210_v49  ;;  %v3927_v47 = vld [vmem:[#allocation7 + $0x128] sm:$0xf0] }
  0xac   :  { %1186 = vmatpush.bf16.msra.mxu0 %v2851_v56  ;;  %v3896_v56 = vld [vmem:[#allocation7 + $0x34] sm:$0xf] }
  0xad   :  { %1200 = vmatpush.bf16.msra.mxu1 %v3043_v57  ;;  %v3185_v57 = vor.u32 %v3894_v55, %v3184_v54  ;;  %v3201_v61 = vor.u32 %v3896_v56, %v3198_v59  ;;  %v3317_v54 = vor.u32 %v3927_v47, %v3316_v46  ;;  %v3336_v56 = vld [vmem:[#allocation7 + $0x140] sm:$0xf]  ;;  %v3918_v46 = vld [vmem:[#allocation7 + $0xe0] sm:$0xf0]  ;;  %v3424_v47 = vld [vmem:[#allocation7 + $0x1f8] sm:$0xf] }
  0xb0   :  { %1187 = vmatpush.bf16.msra.mxu0 %v2827_v63 }
  0xb1   :  { %1201 = vmatpush.bf16.msra.mxu1 %v3019_v0 }
  0xb4   :  { %1188 = vmatpush.bf16.msra.mxu0 %v2803_v5  ;;  %v966_v7 = vpop.f32.mrf.mxu0  ;;  %v3186_v5 = vld [vmem:[#allocation7 + $0x24] sm:$0xf0] }
  0xb5   :  { %1202 = vmatpush.bf16.msra.mxu1 %v2995_v6  ;;  %v980_v8 = vpop.f32.mrf.mxu1  ;;  %v3352_v6 = vld [vmem:[#allocation7 + $0x168] sm:$0xf] }
  0xb6   :  { %v981_v18 = vadd.f32 %v980_v8, %v966_v7  ;;  %v3936_v7 = vld [vmem:[#allocation7 + $0x170] sm:$0xf0] }
  0xb7   :  { %1189 = vmatmul.bf16.vlgmr.msra.gmra.mxu0 %v4256_v58  ;;  %v3232_v58 = vld [vmem:[#allocation7 + $0x78] sm:$0xf]  ;;  %v3353_v10 = vor.u32 %v3936_v7, %v3352_v6  ;;  %v3960_v6 = vld [vmem:[#allocation7 + $0x230] sm:$0xf0]  ;;  %v3923_v7 = vld [vmem:[#allocation7 + $0x10c] sm:$0xf] }
  0xb8   :  { %1203 = vmatmul.bf16.vlgmr.msra.gmra.mxu1 %v4252_v53  ;;  %v3906_v53 = vld [vmem:[#allocation7 + $0x80] sm:$0xf0] }
  0xb9   :  { %1860 = vmatpush.bf16.msrb.mxu1 %v3261_v21  ;;  %v3233_v27 = vor.u32 %v3906_v53, %v3232_v58  ;;  %1832 = vmatpush.bf16.msra.mxu3 %v3353_v10  ;;  %v3342_v53 = vld [vmem:[#allocation7 + $0x15c] sm:$0xf0] }
  0xbb   :  { %1820 = vmatpush.bf16.msra.mxu2 %v3233_v27  ;;  %v3937_v27 = vld [vmem:[#allocation7 + $0x178] sm:$0xf0] }
  0xbc   :  { %v994_v9 = vpop.f32.mrf.mxu2  ;;  %v968_v19 = vpop.f32.mrf.mxu0  ;;  %v3361_v30 = vor.u32 %v3937_v27, %v3360_v22  ;;  %v3957_v22 = vld [vmem:[#allocation7 + $0x218] sm:$0xf0] }
  0xbd   :  { %v982_v20 = vpop.f32.mrf.mxu1  ;;  %v4276_v25 = vadd.f32 %v994_v9, %v981_v18  ;;  %1861 = vmatpush.bf16.msrb.mxu1 %v3249_v28  ;;  %v3189_v9 = vor.u32 %v3893_v3, %v3186_v5  ;;  %v3340_v18 = vld [vmem:[#allocation7 + $0x150] sm:$0xf]  ;;  %v3448_v3 = vld [vmem:[#allocation7 + $0x228] sm:$0xf]  ;;  %v3305_v5 = vor.u32 %v3924_v2, %v3304_v1 }
  0xbe   :  { %v983_v23 = vadd.f32 %v982_v20, %v968_v19  ;;  %v1008_v42 = vpop.f32.mrf.mxu3  ;;  %v3933_v19 = vld [vmem:[#allocation7 + $0x158] sm:$0xf0]  ;;  %v3932_v20 = vld [vmem:[#allocation7 + $0x154] sm:$0xf]  ;;  %v3449_v11 = vor.u32 %v3960_v6, %v3448_v3  ;;  %v3268_v6 = vld [vmem:[#allocation7 + $0xc0] sm:$0xf] }
  0xbf   :  { %v3164_v35 = vmul.f32 -1.442695, %v4276_v25  ;;  %1821 = vmatpush.bf16.msra.mxu2 %v3221_v33  ;;  %v3341_v24 = vor.u32 %v3933_v19, %v3340_v18  ;;  %v3328_v33 = vld [vmem:[#allocation7 + $0x138] sm:$0xf]  ;;  %v3292_v18 = vld [vmem:[#allocation7 + $0xf0] sm:$0xf] }
  0xc0   :  { %1846 = vmatpush.bf16.msrb.mxu0 %v3449_v11  ;;  %v3921_v19 = vld [vmem:[#allocation7 + $0xf8] sm:$0xf0] }
  0xc1   :  { %1862 = vmatpush.bf16.msrb.mxu1 %v3237_v36  ;;  %4043 = vpow2.f32 %v3164_v35  ;;  %1833 = vmatpush.bf16.msra.mxu3 %v3341_v24  ;;  %v3329_v36 = vor.u32 %v3930_v34, %v3328_v33  ;;  %v3294_v33 = vld [vmem:[#allocation7 + $0xfc] sm:$0xf0] }
  0xc3   :  { %1822 = vmatpush.bf16.msra.mxu2 %v3209_v43 }
  0xc4   :  { %v996_v26 = vpop.f32.mrf.mxu2 }
  0xc5   :  { %v4278_v32 = vadd.f32 %v996_v26, %v983_v23  ;;  %1863 = vmatpush.bf16.msrb.mxu1 %v3225_v44  ;;  %v3345_v26 = vor.u32 %v3932_v20, %v3342_v53  ;;  %1834 = vmatpush.bf16.msra.mxu3 %v3329_v36  ;;  %v3436_v20 = vld [vmem:[#allocation7 + $0x210] sm:$0xf]  ;;  %v3293_v53 = vor.u32 %v3921_v19, %v3292_v18  ;;  %v3438_v36 = vld [vmem:[#allocation7 + $0x21c] sm:$0xf0] }
  0xc6   :  { %v1010_v0 = vpop.f32.mrf.mxu3 }
  0xc7   :  { %v3167_v40 = vmul.f32 -1.442695, %v4278_v32  ;;  %v4044_v52 = vpop.eup %4043  ;;  %1823 = vmatpush.bf16.msra.mxu2 %v3197_v48  ;;  %v3926_v48 = vld [vmem:[#allocation7 + $0x124] sm:$0xf] }
  0xc8   :  { %v4282_v63 = vadd.f32 1.0, %v4044_v52 }
  0xc9   :  { %4045 = vpow2.f32 %v3167_v40  ;;  %1864 = vmatpush.bf16.msrb.mxu1 %v3213_v51  ;;  %1835 = vmatpush.bf16.msra.mxu3 %v3317_v54 }
  0xca   :  { %4047 = vrcp.f32 %v4282_v63  ;;  %vm1238_vm0 = vweird.f32 %v4282_v63 }
  0xcb   :  { %1824 = vmatpush.bf16.msra.mxu2 %v3185_v57  ;;  %v3931_v57 = vld [vmem:[#allocation7 + $0x148] sm:$0xf0] }
  0xcd   :  { %1865 = vmatpush.bf16.msrb.mxu1 %v3201_v61  ;;  %v1244_v61 = vand.u32 2147483648, %v4282_v63  ;;  %1836 = vmatpush.bf16.msra.mxu3 %v3305_v5 }
  0xcf   :  { %v4046_v62 = vpop.eup %4045  ;;  %1825 = vmatpush.bf16.msra.mxu2 %v3173_v4  ;;  %v4323_v27 = vor.u32 1.1754944e-38, %v1244_v61  ;;  %v3922_v61 = vld [vmem:[#allocation7 + $0x100] sm:$0xf0] }
  0xd0   :  { %v4284_v8 = vadd.f32 1.0, %v4046_v62  ;;  %v4292_v31 = vpop.eup %4047 }
  0xd1   :  { %1866 = vmatpush.bf16.msrb.mxu1 %v3189_v9  ;;  %v1234_v44 = vmul.f32 %v4292_v31, %v4282_v63  ;;  %v3306_v9 = vld [vmem:[#allocation7 + $0x114] sm:$0xf0]  ;;  %vm1239_vm2 = vweird.f32 %v4292_v31  ;;  %1837 = vmatpush.bf16.msra.mxu3 %v3293_v53 }
  0xd2   :  { %4049 = vrcp.f32 %v4284_v8  ;;  %v3309_v12 = vor.u32 %v3923_v7, %v3306_v9  ;;  %v1287_v15 = vand.u32 2147483647, %v4284_v8  ;;  %v1289_v37 = vand.u32 2147483648, %v4284_v8  ;;  %vm4339_vm6 = vmor %vm1238_vm0, %vm1239_vm2  ;;  %v3915_v7 = vld [vmem:[#allocation7 + $0xc8] sm:$0xf0] }
  0xd3   :  { %1874 = vmatpush.bf16.msrb.mxu2 %v3357_v13  ;;  %v1235_v59 = vsub.f32 1.0, %v1234_v44  ;;  %v3324_v13 = vld [vmem:[#allocation7 + $0x128] sm:$0xf]  ;;  %vm1283_vm4 = vweird.f32 %v4284_v8  ;;  %v3412_v9 = vld [vmem:[#allocation7 + $0x1e0] sm:$0xf]  ;;  %v3269_v11 = vor.u32 %v3915_v7, %v3268_v6 }
  0xd4   :  { %v1022_v50 = vpop.f32.mrf.mxu0  ;;  %vm4327_vm3 = vcmp.eq.f32.partialorder %v1287_v15, 8.507059e+37  ;;  %v3942_v7 = vld [vmem:[#allocation7 + $0x1a0] sm:$0xf0] }
  0xd5   :  { %v1036_v60 = vpop.f32.mrf.mxu1  ;;  %v1023_v21 = vadd.f32 %v1022_v50, %v1008_v42  ;;  %1867 = vmatpush.bf16.msrb.mxu1 %v3177_v17  ;;  %v3934_v42 = vld [vmem:[#allocation7 + $0x160] sm:$0xf0]  ;;  %v3318_v50 = vld [vmem:[#allocation7 + $0x12c] sm:$0xf0]  ;;  %v1236_v24 = vmul.f32 %v4292_v31, %v1235_v59 }
  0xd6   :  { %v3349_v45 = vor.u32 %v3934_v42, %v3348_v39  ;;  %v3321_v55 = vor.u32 %v3926_v48, %v3318_v50  ;;  %v3312_v39 = vld [vmem:[#allocation7 + $0x110] sm:$0xf]  ;;  %v3954_v50 = vld [vmem:[#allocation7 + $0x200] sm:$0xf0] }
  0xd7   :  { %1875 = vmatpush.bf16.msrb.mxu2 %v3345_v26  ;;  %v4294_v35 = vadd.f32 %v1036_v60, %v1023_v21  ;;  %v1242_v60 = vand.u32 2147483647, %v4282_v63  ;;  %v1237_v54 = vadd.f32 %v4292_v31, %v1236_v24  ;;  %v1290_v63 = vor.u32 1.1754944e-38, %v1289_v37  ;;  %v3956_v26 = vld [vmem:[#allocation7 + $0x214] sm:$0xf] }
  0xd8   :  { %v4298_v43 = vpop.eup %4049 }
  0xd9   :  { %1916 = vmatpush.bf16.msra.mxu1 %v3361_v30  ;;  %v3165_v49 = vmul.f32 -1.442695, %v4294_v35  ;;  %v1279_v51 = vmul.f32 %v4298_v43, %v4284_v8  ;;  %vm4319_vm1 = vcmp.eq.f32.partialorder %v1242_v60, 8.507059e+37  ;;  %v3437_v30 = vor.u32 %v3957_v22, %v3436_v20  ;;  %v3300_v60 = vld [vmem:[#allocation7 + $0xf8] sm:$0xf] }
  0xda   :  { %vm1284_vm5 = vweird.f32 %v4298_v43  ;;  %v3301_v5 = vor.u32 %v3922_v61, %v3300_v60  ;;  %v1241_v15 = vsel %vm4339_vm6, %v4292_v31, %v1237_v54  ;;  %v3959_v22 = vld [vmem:[#allocation7 + $0x22c] sm:$0xf]  ;;  %v3945_v54 = vld [vmem:[#allocation7 + $0x1b8] sm:$0xf0]  ;;  %v3426_v60 = vld [vmem:[#allocation7 + $0x204] sm:$0xf0] }
  0xdb   :  { %1876 = vmatpush.bf16.msrb.mxu2 %v3333_v41  ;;  %4051 = vpow2.f32 %v3165_v49  ;;  %v1280_v10 = vsub.f32 1.0, %v1279_v51  ;;  %v3925_v41 = vld [vmem:[#allocation7 + $0x118] sm:$0xf0]  ;;  %1847 = vmatpush.bf16.msrb.mxu0 %v3437_v30  ;;  %vm4348_vm7 = vmor %vm1283_vm4, %vm1284_vm5 }
  0xdc   :  { %v1024_v14 = vpop.f32.mrf.mxu0  ;;  %v4288_v58 = vpop.f32.mrf.mxu2  ;;  %v3313_v44 = vor.u32 %v3925_v41, %v3312_v39  ;;  %v3917_v51 = vld [vmem:[#allocation7 + $0xdc] sm:$0xf]  ;;  %v3276_v41 = vld [vmem:[#allocation7 + $0xc8] sm:$0xf] }
  0xdd   :  { %v1025_v23 = vadd.f32 %v1024_v14, %v1010_v0  ;;  %v1038_v28 = vpop.f32.mrf.mxu1  ;;  %1917 = vmatpush.bf16.msra.mxu1 %v3349_v45  ;;  %v3337_v0 = vor.u32 %v3931_v57, %v3336_v56  ;;  %v3928_v14 = vld [vmem:[#allocation7 + $0x130] sm:$0xf0]  ;;  %v3280_v45 = vld [vmem:[#allocation7 + $0xd8] sm:$0xf]  ;;  %v3425_v57 = vor.u32 %v3954_v50, %v3424_v47  ;;  %v3456_v47 = vld [vmem:[#allocation7 + $0x230] sm:$0xf] }
  0xde   :  { %v4290_v29 = vpop.f32.mrf.mxu3  ;;  %v3325_v16 = vor.u32 %v3928_v14, %v3324_v13  ;;  %v3281_v49 = vor.u32 %v3918_v46, %v3280_v45  ;;  %v3914_v13 = vld [vmem:[#allocation7 + $0xc4] sm:$0xf]  ;;  %v3270_v14 = vld [vmem:[#allocation7 + $0xcc] sm:$0xf0] }
  0xdf   :  { %v4296_v40 = vadd.f32 %v1038_v28, %v1025_v23  ;;  %1877 = vmatpush.bf16.msrb.mxu2 %v3321_v55  ;;  %v3920_v23 = vld [vmem:[#allocation7 + $0xf4] sm:$0xf]  ;;  %v1281_v28 = vmul.f32 %v4298_v43, %v1280_v10  ;;  %1848 = vmatpush.bf16.msrb.mxu0 %v3425_v57  ;;  %v1065_v10 = vadd.f32 %v4290_v29, %v4288_v58  ;;  %v3288_v29 = vld [vmem:[#allocation7 + $0xe0] sm:$0xf] }
  0xe0   :  { %v3297_v38 = vor.u32 %v3920_v23, %v3294_v33  ;;  %1838 = vmatpush.bf16.msra.mxu3 %v3281_v49  ;;  %v3273_v20 = vor.u32 %v3914_v13, %v3270_v14  ;;  %v3450_v23 = vld [vmem:[#allocation7 + $0x234] sm:$0xf0]  ;;  %v3441_v49 = vor.u32 %v3956_v26, %v3438_v36  ;;  %v3390_v26 = vld [vmem:[#allocation7 + $0x1bc] sm:$0xf0] }
  0xe1   :  { %v3168_v52 = vmul.f32 -1.442695, %v4296_v40  ;;  %1918 = vmatpush.bf16.msra.mxu1 %v3337_v0  ;;  %v4052_v34 = vpop.eup %4051  ;;  %v1282_v56 = vadd.f32 %v4298_v43, %v1281_v28  ;;  %v3453_v31 = vor.u32 %v3959_v22, %v3450_v23  ;;  %v3444_v0 = vld [vmem:[#allocation7 + $0x218] sm:$0xf] }
  0xe2   :  { %v4352_v1 = vadd.f32 1.0, %v4052_v34  ;;  %v3948_v34 = vld [vmem:[#allocation7 + $0x1d0] sm:$0xf0] }
  0xe3   :  { %4053 = vpow2.f32 %v3168_v52  ;;  %1878 = vmatpush.bf16.msrb.mxu2 %v3309_v12  ;;  %v3282_v52 = vld [vmem:[#allocation7 + $0xe4] sm:$0xf0]  ;;  %v3951_v12 = vld [vmem:[#allocation7 + $0x1e8] sm:$0xf0] }
  0xe4   :  { %v4308_v62 = vpop.f32.mrf.mxu2  ;;  %v3285_v59 = vor.u32 %v3917_v51, %v3282_v52  ;;  %v3413_v58 = vor.u32 %v3951_v12, %v3412_v9  ;;  %4055 = vrcp.f32 %v4352_v1  ;;  %1839 = vmatpush.bf16.msra.mxu3 %v3269_v11  ;;  %v3388_v52 = vld [vmem:[#allocation7 + $0x1b0] sm:$0xf]  ;;  %v3950_v9 = vld [vmem:[#allocation7 + $0x1e4] sm:$0xf]  ;;  %vm1253_vm8 = vweird.f32 %v4352_v1 }
  0xe5   :  { %1919 = vmatpush.bf16.msra.mxu1 %v3325_v16  ;;  %v1286_v16 = vsel %vm4348_vm7, %v4298_v43, %v1282_v56  ;;  %v3400_v43 = vld [vmem:[#allocation7 + $0x1c8] sm:$0xf] }
  0xe6   :  { %v4310_v4 = vpop.f32.mrf.mxu3  ;;  %1849 = vmatpush.bf16.msrb.mxu0 %v3413_v58  ;;  %v1291_v24 = vsel %vm4327_vm3, %v1290_v63, %v1286_v16  ;;  %v3401_v39 = vor.u32 %v3948_v34, %v3400_v43  ;;  %v3958_v63 = vld [vmem:[#allocation7 + $0x220] sm:$0xf0]  ;;  %v3955_v16 = vld [vmem:[#allocation7 + $0x208] sm:$0xf0]  ;;  %v3364_v58 = vld [vmem:[#allocation7 + $0x180] sm:$0xf] }
  0xe7   :  { %1879 = vmatpush.bf16.msrb.mxu2 %v3297_v38  ;;  %v1067_v8 = vadd.f32 %v4310_v4, %v4308_v62  ;;  %v3919_v62 = vld [vmem:[#allocation7 + $0xe8] sm:$0xf0]  ;;  %v3445_v13 = vor.u32 %v3958_v63, %v3444_v0 }
  0xe8   :  { %v3289_v53 = vor.u32 %v3919_v62, %v3288_v29  ;;  %1888 = vmatpush.bf16.msrb.mxu3 %v3453_v31  ;;  %v3939_v29 = vld [vmem:[#allocation7 + $0x188] sm:$0xf0]  ;;  %v3913_v31 = vld [vmem:[#allocation7 + $0xb8] sm:$0xf0] }
  0xe9   :  { %v4054_v42 = vpop.eup %4053  ;;  %1920 = vmatpush.bf16.msra.mxu1 %v3313_v44  ;;  %v3365_v62 = vor.u32 %v3939_v29, %v3364_v58  ;;  %v3366_v58 = vld [vmem:[#allocation7 + $0x18c] sm:$0xf0]  ;;  %v3228_v29 = vld [vmem:[#allocation7 + $0x68] sm:$0xf] }
  0xea   :  { %v4354_v2 = vadd.f32 1.0, %v4054_v42  ;;  %v3916_v42 = vld [vmem:[#allocation7 + $0xd0] sm:$0xf0]  ;;  %1850 = vmatpush.bf16.msrb.mxu0 %v3401_v39  ;;  %v4381_v50 = vpop.eup %4055 }
  0xeb   :  { %1880 = vmatpush.bf16.msrb.mxu2 %v3285_v59  ;;  %v3277_v44 = vor.u32 %v3916_v42, %v3276_v41  ;;  %vm1254_vm9 = vweird.f32 %v4381_v50  ;;  %v3944_v42 = vld [vmem:[#allocation7 + $0x1b4] sm:$0xf] }
  0xec   :  { %4057 = vrcp.f32 %v4354_v2  ;;  %1889 = vmatpush.bf16.msrb.mxu3 %v3441_v49  ;;  %v3393_v36 = vor.u32 %v3944_v42, %v3390_v26  ;;  %vm1298_vm10 = vweird.f32 %v4354_v2  ;;  %vm4407_vm12 = vmor %vm1253_vm8, %vm1254_vm9 }
  0xed   :  { %1921 = vmatpush.bf16.msra.mxu1 %v3301_v5  ;;  %v3376_v5 = vld [vmem:[#allocation7 + $0x198] sm:$0xf] }
  0xee   :  { %v3377_v12 = vor.u32 %v3942_v7, %v3376_v5  ;;  %v3907_v5 = vld [vmem:[#allocation7 + $0x88] sm:$0xf0] }
  0xef   :  { %1881 = vmatpush.bf16.msrb.mxu2 %v3273_v20  ;;  %v3402_v20 = vld [vmem:[#allocation7 + $0x1d4] sm:$0xf0] }
  0xf1   :  { %1922 = vmatpush.bf16.msra.mxu1 %v3289_v53  ;;  %v3264_v53 = vld [vmem:[#allocation7 + $0xb0] sm:$0xf] }
  0xf2   :  { %v4384_v55 = vpop.eup %4057 }
  0xf3   :  { %v1294_v11 = vmul.f32 %v4384_v55, %v4354_v2  ;;  %vm1299_vm11 = vweird.f32 %v4384_v55 }
  0xf4   :  { %v4313_v17 = vpop.f32.mrf.mxu0  ;;  %vm4423_vm13 = vmor %vm1298_vm10, %vm1299_vm11 }
  0xf5   :  { %v4316_v21 = vpop.f32.mrf.mxu1  ;;  %v4375_v28 = vadd.f32 %v4313_v17, %v1065_v10  ;;  %v1326_v17 = vmul.f32 %v1291_v24, %v4278_v32  ;;  %1923 = vmatpush.bf16.msra.mxu1 %v3277_v44  ;;  %v3953_v32 = vld [vmem:[#allocation7 + $0x1fc] sm:$0xf]  ;;  %v3414_v10 = vld [vmem:[#allocation7 + $0x1ec] sm:$0xf0]  ;;  %v3952_v24 = vld [vmem:[#allocation7 + $0x1f0] sm:$0xf0] }
  0xf6   :  { %v3417_v14 = vor.u32 %v3950_v9, %v3414_v10  ;;  %v3396_v9 = vld [vmem:[#allocation7 + $0x1b8] sm:$0xf]  ;;  %v3946_v10 = vld [vmem:[#allocation7 + $0x1c0] sm:$0xf0] }
  0xf7   :  { %v3166_v51 = vmul.f32 -1.442695, %v4375_v28 }
  0xf9   :  { %4059 = vpow2.f32 %v3166_v51 }
  0xfc   :  { %v1106_v48 = vpop.f32.mrf.mxu2  ;;  %v1080_v19 = vpop.f32.mrf.mxu0 }
  0xfd   :  { %v1107_v18 = vadd.f32 %v1106_v48, %v4316_v21  ;;  %v1094_v4 = vpop.f32.mrf.mxu1  ;;  %v1246_v21 = vsel %vm4319_vm1, %v4323_v27, %v1241_v15  ;;  %v4377_v30 = vadd.f32 %v1080_v19, %v1067_v8  ;;  %v3961_v48 = vld [vmem:[#allocation7 + $0x238] sm:$0xf0]  ;;  %v1249_v8 = vmul.f32 %v4381_v50, %v4352_v1  ;;  %v3432_v15 = vld [vmem:[#allocation7 + $0x200] sm:$0xf] }
  0xfe   :  { %v1120_v3 = vpop.f32.mrf.mxu3  ;;  %v1323_v45 = vmul.f32 %v1246_v21, %v4276_v25  ;;  %v3389_v25 = vor.u32 %v3945_v54, %v3388_v52  ;;  %v3457_v61 = vor.u32 %v3961_v48, %v3456_v47  ;;  %v1295_v19 = vsub.f32 1.0, %v1294_v11  ;;  %v3420_v21 = vld [vmem:[#allocation7 + $0x1e8] sm:$0xf]  ;;  %v3408_v47 = vld [vmem:[#allocation7 + $0x1d0] sm:$0xf] }
  0xff   :  { %v1121_v37 = vadd.f32 %v1120_v3, %v1107_v18  ;;  %v3169_v56 = vmul.f32 -1.442695, %v4377_v30  ;;  %v3429_v3 = vor.u32 %v3953_v32, %v3426_v60  ;;  %v1250_v18 = vsub.f32 1.0, %v1249_v8  ;;  %v4060_v34 = vpop.eup %4059  ;;  %v3949_v48 = vld [vmem:[#allocation7 + $0x1d8] sm:$0xf0] }
 0x100   :  { %1851 = vmatpush.bf16.msrb.mxu0 %v3389_v25  ;;  %v3433_v22 = vor.u32 %v3955_v16, %v3432_v15  ;;  %v1296_v41 = vmul.f32 %v4384_v55, %v1295_v19  ;;  %v3421_v44 = vor.u32 %v3952_v24, %v3420_v21  ;;  %v1302_v52 = vand.u32 2147483647, %v4354_v2  ;;  %v3941_v32 = vld [vmem:[#allocation7 + $0x19c] sm:$0xf]  ;;  %v3378_v60 = vld [vmem:[#allocation7 + $0x1a4] sm:$0xf0] }
 0x101   :  { %v1329_v57 = vmul.f32 %v1323_v45, %v1121_v37  ;;  %1890 = vmatpush.bf16.msrb.mxu3 %v3429_v3  ;;  %4061 = vpow2.f32 %v3169_v56  ;;  %v1251_v39 = vmul.f32 %v4381_v50, %v1250_v18  ;;  %v3252_v45 = vld [vmem:[#allocation7 + $0x98] sm:$0xf]  ;;  %v1304_v54 = vand.u32 2147483648, %v4354_v2  ;;  %v3938_v19 = vld [vmem:[#allocation7 + $0x184] sm:$0xf] }
 0x102   :  { %v4413_v56 = vadd.f32 1.0, %v4060_v34  ;;  %v1297_v25 = vadd.f32 %v4384_v55, %v1296_v41  ;;  %v3409_v63 = vor.u32 %v3949_v48, %v3408_v47  ;;  %v3381_v3 = vor.u32 %v3941_v32, %v3378_v60  ;;  %v3216_v21 = vld [vmem:[#allocation7 + $0x50] sm:$0xf]  ;;  %v3901_v24 = vld [vmem:[#allocation7 + $0x58] sm:$0xf0] }
 0x103   :  { %vm4431_vm15 = vcmp.eq.f32.partialorder %v1302_v52, 8.507059e+37  ;;  %v3180_v32 = vld [vmem:[#allocation7 + $0x8] sm:$0xf]  ;;  %v3892_v60 = vld [vmem:[#allocation7 + $0x10] sm:$0xf0] }
 0x104   :  { %v1108_v33 = vpop.f32.mrf.mxu2  ;;  %1852 = vmatpush.bf16.msrb.mxu0 %v3377_v12  ;;  %v1305_v12 = vor.u32 1.1754944e-38, %v1304_v54  ;;  %4063 = vrcp.f32 %v4413_v56  ;;  %v1301_v16 = vsel %vm4423_vm13, %v4384_v55, %v1297_v25  ;;  %v3895_v54 = vld [vmem:[#allocation7 + $0x28] sm:$0xf0]  ;;  %vm1268_vm0 = vweird.f32 %v4413_v56 }
 0x105   :  { %v1109_v38 = vadd.f32 %v1108_v33, %v1094_v4  ;;  %v3947_v4 = vld [vmem:[#allocation7 + $0x1cc] sm:$0xf]  ;;  %1891 = vmatpush.bf16.msrb.mxu3 %v3417_v14  ;;  %v3265_v33 = vor.u32 %v3913_v31, %v3264_v53 }
 0x106   :  { %v1122_v27 = vpop.f32.mrf.mxu3  ;;  %v3405_v23 = vor.u32 %v3947_v4, %v3402_v20  ;;  %v3369_v4 = vor.u32 %v3938_v19, %v3366_v58  ;;  %v3904_v20 = vld [vmem:[#allocation7 + $0x70] sm:$0xf0]  ;;  %v1306_v55 = vsel %vm4431_vm15, %v1305_v12, %v1301_v16 }
 0x107   :  { %v1123_v46 = vadd.f32 %v1122_v27, %v1109_v38  ;;  %v4062_v38 = vpop.eup %4061  ;;  %v1257_v27 = vand.u32 2147483647, %v4352_v1  ;;  %v1327_v42 = vmul.f32 %v1306_v55, %v4296_v40  ;;  %v3984_v55 = vld [vmem:[#allocation8 + $0xb0] sm:$0xf0] }
 0x108   :  { %1853 = vmatpush.bf16.msrb.mxu0 %v3365_v62  ;;  %v3397_v62 = vor.u32 %v3946_v10, %v3396_v9 }
 0x109   :  { %v1332_v59 = vmul.f32 %v1326_v17, %v1123_v46  ;;  %1892 = vmatpush.bf16.msrb.mxu3 %v3405_v23  ;;  %v3910_v17 = vld [vmem:[#allocation7 + $0xa0] sm:$0xf0]  ;;  %v1259_v46 = vand.u32 2147483648, %v4352_v1  ;;  %v3240_v1 = vld [vmem:[#allocation7 + $0x80] sm:$0xf]  ;;  %vm4427_vm14 = vcmp.eq.f32.partialorder %v1257_v27, 8.507059e+37 }
 0x10a   :  { %v3253_v49 = vor.u32 %v3910_v17, %v3252_v45  ;;  %v3241_v8 = vor.u32 %v3907_v5, %v3240_v1  ;;  %v3943_v23 = vld [vmem:[#allocation7 + $0x1a8] sm:$0xf0]  ;;  %v3372_v27 = vld [vmem:[#allocation7 + $0x188] sm:$0xf]  ;;  %v3898_v45 = vld [vmem:[#allocation7 + $0x40] sm:$0xf0] }
 0x10b   :  { %v4387_v6 = vpack.c.bf16 %v1332_v59, %v1329_v57  ;;  %v4415_v57 = vadd.f32 1.0, %v4062_v38  ;;  %v1252_v59 = vadd.f32 %v4381_v50, %v1251_v39  ;;  %v1260_v11 = vor.u32 1.1754944e-38, %v1259_v46 }
 0x10c   :  { %1902 = vmatpush.bf16.msra.mxu0 %v3265_v33  ;;  %v4447_v33 = vpop.eup %4063  ;;  %v3217_v38 = vor.u32 %v3901_v24, %v3216_v21  ;;  %v1274_v5 = vand.u32 2147483648, %v4413_v56  ;;  %v3532_v21 = vld [vmem:[#allocation8 + $0x90] sm:$0xf]  ;;  %v3981_v24 = vld [vmem:[#allocation8 + $0x98] sm:$0xf0] }
 0x10d   :  { %1826 = vmatmul.bf16.vlgmr.msra.gmra.mxu2 %v4387_v6  ;;  %1868 = vmatmul.bf16.vlgmr.msrb.gmra.mxu1 %v4387_v6  ;;  %v1256_v15 = vsel %vm4407_vm12, %v4381_v50, %v1252_v59  ;;  %4065 = vrcp.f32 %v4415_v57  ;;  %v3229_v50 = vor.u32 %v3904_v20, %v3228_v29  ;;  %v1264_v47 = vmul.f32 %v4447_v33, %v4413_v56 }
 0x10e   :  { %1930 = vmatpush.bf16.msra.mxu2 %v3457_v61  ;;  %1893 = vmatpush.bf16.msrb.mxu3 %v3393_v36  ;;  %v1261_v31 = vsel %vm4427_vm14, %v1260_v11, %v1256_v15  ;;  %v3204_v36 = vld [vmem:[#allocation7 + $0x38] sm:$0xf]  ;;  %vm1269_vm1 = vweird.f32 %v4447_v33  ;;  %vm1313_vm2 = vweird.f32 %v4415_v57  ;;  %v1319_v7 = vand.u32 2147483648, %v4415_v57 }
 0x10f   :  { %v1324_v41 = vmul.f32 %v1261_v31, %v4294_v35  ;;  %v3205_v52 = vor.u32 %v3898_v45, %v3204_v36  ;;  %v3192_v35 = vld [vmem:[#allocation7 + $0x20] sm:$0xf]  ;;  %v1265_v40 = vsub.f32 1.0, %v1264_v47  ;;  %vm1270_vm4 = vmor %vm1268_vm0, %vm1269_vm1  ;;  %v1317_v2 = vand.u32 2147483647, %v4415_v57 }
 0x110   :  { %1903 = vmatpush.bf16.msra.mxu0 %v3253_v49  ;;  %v3193_v25 = vor.u32 %v3895_v54, %v3192_v35  ;;  %v1275_v12 = vor.u32 1.1754944e-38, %v1274_v5  ;;  %v3544_v31 = vld [vmem:[#allocation8 + $0xa8] sm:$0xf]  ;;  %v3972_v45 = vld [vmem:[#allocation8 + $0x50] sm:$0xf0] }
 0x111   :  { %v1266_v1 = vmul.f32 %v4447_v33, %v1265_v40  ;;  %vm1318_vm7 = vcmp.eq.f32.partialorder %v1317_v2, 8.507059e+37  ;;  %v3496_v36 = vld [vmem:[#allocation8 + $0x48] sm:$0xf]  ;;  %v4008_v47 = vld [vmem:[#allocation8 + $0x170] sm:$0xf0] }
 0x112   :  { %1931 = vmatpush.bf16.msra.mxu2 %v3445_v13  ;;  %1894 = vmatpush.bf16.msrb.mxu3 %v3381_v3  ;;  %v1272_v3 = vand.u32 2147483647, %v4413_v56  ;;  %v3977_v35 = vld [vmem:[#allocation8 + $0x7c] sm:$0xf]  ;;  %v3522_v54 = vld [vmem:[#allocation8 + $0x84] sm:$0xf0] }
 0x113   :  { %v4066_v39 = vpop.eup %4065  ;;  %v3525_v40 = vor.u32 %v3977_v35, %v3522_v54  ;;  %v3616_v5 = vld [vmem:[#allocation8 + $0x138] sm:$0xf]  ;;  %v3971_v2 = vld [vmem:[#allocation8 + $0x4c] sm:$0xf]  ;;  %v3990_v35 = vld [vmem:[#allocation8 + $0xe0] sm:$0xf0] }
 0x114   :  { %v1134_v43 = vpop.f32.mrf.mxu0  ;;  %1904 = vmatpush.bf16.msra.mxu0 %v3241_v8  ;;  %v1309_v48 = vmul.f32 %v4066_v39, %v4415_v57  ;;  %vm1314_vm3 = vweird.f32 %v4066_v39  ;;  %v1267_v8 = vadd.f32 %v4447_v33, %v1266_v1  ;;  %vm1273_vm6 = vcmp.eq.f32.partialorder %v1272_v3, 8.507059e+37  ;;  %v3966_v1 = vld [vmem:[#allocation8 + $0x20] sm:$0xf0]  ;;  %v3700_v54 = vld [vmem:[#allocation8 + $0x1e0] sm:$0xf] }
 0x115   :  { %v1148_v37 = vpop.f32.mrf.mxu1  ;;  %vm1315_vm5 = vmor %vm1313_vm2, %vm1314_vm3 }
 0x116   :  { %1932 = vmatpush.bf16.msra.mxu2 %v3433_v22  ;;  %v1149_v18 = vadd.f32 %v1148_v37, %v1134_v43  ;;  %v3384_v22 = vld [vmem:[#allocation7 + $0x1a0] sm:$0xf]  ;;  %1895 = vmatpush.bf16.msrb.mxu3 %v3369_v4  ;;  %v1310_v59 = vsub.f32 1.0, %v1309_v48 }
 0x117   :  { %v3385_v37 = vor.u32 %v3943_v23, %v3384_v22 }
 0x118   :  { %1905 = vmatpush.bf16.msra.mxu0 %v3229_v50  ;;  %v1311_v61 = vmul.f32 %v4066_v39, %v1310_v59  ;;  %v3628_v59 = vld [vmem:[#allocation8 + $0x150] sm:$0xf] }
 0x11a   :  { %1933 = vmatpush.bf16.msra.mxu2 %v3421_v44  ;;  %v3940_v44 = vld [vmem:[#allocation7 + $0x190] sm:$0xf0]  ;;  %v1312_v11 = vadd.f32 %v4066_v39, %v1311_v61 }
 0x11b   :  { %v3373_v49 = vor.u32 %v3940_v44, %v3372_v27  ;;  %v3534_v27 = vld [vmem:[#allocation8 + $0x9c] sm:$0xf0] }
 0x11c   :  { %v1162_v0 = vpop.f32.mrf.mxu2  ;;  %v1136_v13 = vpop.f32.mrf.mxu0  ;;  %1906 = vmatpush.bf16.msra.mxu0 %v3217_v38  ;;  %v1316_v15 = vsel %vm1315_vm5, %v4066_v39, %v1312_v11  ;;  %v3975_v38 = vld [vmem:[#allocation8 + $0x68] sm:$0xf0] }
 0x11d   :  { %v1150_v14 = vpop.f32.mrf.mxu1  ;;  %v1163_v43 = vadd.f32 %v1162_v0, %v1149_v18  ;;  %v1176_v0 = vpop.f32.mrf.mxu3  ;;  %v3983_v39 = vld [vmem:[#allocation8 + $0xac] sm:$0xf] }
 0x11e   :  { %1934 = vmatpush.bf16.msra.mxu2 %v3409_v63  ;;  %v1151_v53 = vadd.f32 %v1150_v14, %v1136_v13  ;;  %v3181_v63 = vor.u32 %v3892_v60, %v3180_v32  ;;  %v1320_v13 = vor.u32 1.1754944e-38, %v1319_v7  ;;  %v1271_v14 = vsel %vm1270_vm4, %v4447_v33, %v1267_v8  ;;  %v3472_v32 = vld [vmem:[#allocation8 + $0x18] sm:$0xf]  ;;  %v4002_v7 = vld [vmem:[#allocation8 + $0x140] sm:$0xf0] }
 0x11f   :  { %v1330_v17 = vmul.f32 %v1324_v41, %v1163_v43  ;;  %v1276_v16 = vsel %vm1273_vm6, %v1275_v12, %v1271_v14  ;;  %v3545_v43 = vor.u32 %v3984_v55, %v3544_v31  ;;  %v3533_v33 = vor.u32 %v3981_v24, %v3532_v21  ;;  %v3546_v41 = vld [vmem:[#allocation8 + $0xb4] sm:$0xf0]  ;;  %v3963_v8 = vld [vmem:[#allocation8 + $0x8] sm:$0xf0]  ;;  %v3996_v31 = vld [vmem:[#allocation8 + $0x110] sm:$0xf0] }
 0x120   :  { %1907 = vmatpush.bf16.msra.mxu0 %v3205_v52  ;;  %v1321_v18 = vsel %vm1318_vm7, %v1320_v13, %v1316_v15  ;;  %v1325_v20 = vmul.f32 %v1276_v16, %v4375_v28  ;;  %v3520_v28 = vld [vmem:[#allocation8 + $0x78] sm:$0xf]  ;;  %v3473_v61 = vor.u32 %v3966_v1, %v3472_v32  ;;  %v4007_v13 = vld [vmem:[#allocation8 + $0x16c] sm:$0xf]  ;;  %v3724_v55 = vld [vmem:[#allocation8 + $0x210] sm:$0xf] }
 0x121   :  { %v1328_v57 = vmul.f32 %v1321_v18, %v4377_v30  ;;  %v3508_v30 = vld [vmem:[#allocation8 + $0x60] sm:$0xf]  ;;  %v3498_v12 = vld [vmem:[#allocation8 + $0x54] sm:$0xf0]  ;;  %v3999_v16 = vld [vmem:[#allocation8 + $0x128] sm:$0xf0] }
 0x122   :  { %1935 = vmatpush.bf16.msra.mxu2 %v3397_v62  ;;  %v3501_v14 = vor.u32 %v3971_v2, %v3498_v12  ;;  %v3642_v15 = vld [vmem:[#allocation8 + $0x174] sm:$0xf0]  ;;  %v4029_v21 = vld [vmem:[#allocation8 + $0x218] sm:$0xf0]  ;;  %v3995_v32 = vld [vmem:[#allocation8 + $0x10c] sm:$0xf] }
 0x123   :  { %v3645_v18 = vor.u32 %v4007_v13, %v3642_v15  ;;  %v3965_v24 = vld [vmem:[#allocation8 + $0x1c] sm:$0xf]  ;;  %v3992_v13 = vld [vmem:[#allocation8 + $0xf4] sm:$0xf] }
 0x124   :  { %v1164_v34 = vpop.f32.mrf.mxu2  ;;  %1908 = vmatpush.bf16.msra.mxu0 %v3193_v25  ;;  %v4005_v25 = vld [vmem:[#allocation8 + $0x158] sm:$0xf0] }
 0x125   :  { %v1165_v26 = vadd.f32 %v1164_v34, %v1151_v53  ;;  %v1178_v19 = vpop.f32.mrf.mxu3  ;;  %v3978_v34 = vld [vmem:[#allocation8 + $0x80] sm:$0xf0]  ;;  %v3629_v60 = vor.u32 %v4005_v25, %v3628_v59  ;;  %v4023_v59 = vld [vmem:[#allocation8 + $0x1e8] sm:$0xf0] }
 0x126   :  { %1936 = vmatpush.bf16.msra.mxu2 %v3385_v37  ;;  %v3521_v37 = vor.u32 %v3978_v34, %v3520_v28  ;;  %v3725_v28 = vor.u32 %v4029_v21, %v3724_v55  ;;  %v3701_v25 = vor.u32 %v4023_v59, %v3700_v54  ;;  %v3664_v55 = vld [vmem:[#allocation8 + $0x198] sm:$0xf]  ;;  %v3982_v59 = vld [vmem:[#allocation8 + $0xa0] sm:$0xf0] }
 0x127   :  { %v1333_v46 = vmul.f32 %v1327_v42, %v1165_v26  ;;  %v3549_v42 = vor.u32 %v3983_v39, %v3546_v41  ;;  %v3980_v26 = vld [vmem:[#allocation8 + $0x94] sm:$0xf]  ;;  %v3993_v41 = vld [vmem:[#allocation8 + $0xf8] sm:$0xf0]  ;;  %v3540_v54 = vld [vmem:[#allocation8 + $0x98] sm:$0xf] }
 0x128   :  { %1909 = vmatpush.bf16.msra.mxu0 %v3181_v63  ;;  %v3537_v44 = vor.u32 %v3980_v26, %v3534_v27  ;;  %v3510_v63 = vld [vmem:[#allocation8 + $0x6c] sm:$0xf0]  ;;  %v4026_v26 = vld [vmem:[#allocation8 + $0x200] sm:$0xf0] }
 0x129   :  { %v1336_v51 = vpack.c.bf16 %v1333_v46, %v1330_v17  ;;  %v3497_v17 = vor.u32 %v3972_v45, %v3496_v36  ;;  %v3640_v46 = vld [vmem:[#allocation8 + $0x168] sm:$0xf]  ;;  %v3462_v36 = vld [vmem:[#allocation8 + $0xc] sm:$0xf0]  ;;  %v3998_v45 = vld [vmem:[#allocation8 + $0x124] sm:$0xf] }
 0x12a   :  { %1937 = vmatpush.bf16.msra.mxu2 %v3373_v49  ;;  %v3641_v48 = vor.u32 %v4008_v47, %v3640_v46  ;;  %v3484_v49 = vld [vmem:[#allocation8 + $0x30] sm:$0xf] }
 0x12b   :  { %1840 = vmatmul.bf16.vlgmr.msra.gmra.mxu3 %v1336_v51  ;;  %1882 = vmatmul.bf16.vlgmr.msrb.gmra.mxu2 %v1336_v51  ;;  %v3606_v46 = vld [vmem:[#allocation8 + $0x12c] sm:$0xf0] }
 0x12c   :  { %1924 = vmatmul.bf16.vlgmr.msra.gmra.mxu1 %v1336_v51  ;;  %2435 = vmatpush.bf16.msra.mxu3 %v3545_v43  ;;  %v3969_v51 = vld [vmem:[#allocation8 + $0x38] sm:$0xf0]  ;;  %v3648_v47 = vld [vmem:[#allocation8 + $0x170] sm:$0xf] }
 0x12d   :  { %v3485_v52 = vor.u32 %v3969_v51, %v3484_v49  ;;  %v3609_v49 = vor.u32 %v3998_v45, %v3606_v46  ;;  %v3552_v45 = vld [vmem:[#allocation8 + $0xb0] sm:$0xf]  ;;  %v3985_v46 = vld [vmem:[#allocation8 + $0xb8] sm:$0xf0] }
 0x12e   :  { %2477 = vmatpush.bf16.msrb.mxu2 %v3549_v42  ;;  %v3712_v42 = vld [vmem:[#allocation8 + $0x1f8] sm:$0xf] }
 0x130   :  { %2436 = vmatpush.bf16.msra.mxu3 %v3533_v33  ;;  %v3474_v33 = vld [vmem:[#allocation8 + $0x24] sm:$0xf0] }
 0x131   :  { %v3477_v34 = vor.u32 %v3965_v24, %v3474_v33  ;;  %v4025_v24 = vld [vmem:[#allocation8 + $0x1fc] sm:$0xf]  ;;  %v3714_v33 = vld [vmem:[#allocation8 + $0x204] sm:$0xf0] }
 0x132   :  { %2478 = vmatpush.bf16.msrb.mxu2 %v3537_v44  ;;  %v3962_v44 = vld [vmem:[#allocation8 + $0x4] sm:$0xf] }
 0x134   :  { %v1190_v9 = vpop.f32.mrf.mxu0  ;;  %2437 = vmatpush.bf16.msra.mxu3 %v3521_v37  ;;  %v3618_v37 = vld [vmem:[#allocation8 + $0x144] sm:$0xf0] }
 0x135   :  { %v1204_v10 = vpop.f32.mrf.mxu1  ;;  %v1191_v56 = vadd.f32 %v1190_v9, %v1176_v0  ;;  %v3974_v0 = vld [vmem:[#allocation8 + $0x64] sm:$0xf]  ;;  %v3617_v9 = vor.u32 %v4002_v7, %v3616_v5  ;;  %v3987_v5 = vld [vmem:[#allocation8 + $0xc8] sm:$0xf0]  ;;  %v3688_v7 = vld [vmem:[#allocation8 + $0x1c8] sm:$0xf] }
 0x136   :  { %2479 = vmatpush.bf16.msrb.mxu2 %v3525_v40  ;;  %v3513_v3 = vor.u32 %v3974_v0, %v3510_v63  ;;  %v4006_v0 = vld [vmem:[#allocation8 + $0x160] sm:$0xf0] }
 0x137   :  { %v1205_v29 = vadd.f32 %v1204_v10, %v1191_v56  ;;  %v3460_v10 = vld [vmem:[#allocation8] sm:$0xf] }
 0x138   :  { %v3461_v11 = vor.u32 %v3963_v8, %v3460_v10  ;;  %v3604_v56 = vld [vmem:[#allocation8 + $0x120] sm:$0xf]  ;;  %v4020_v10 = vld [vmem:[#allocation8 + $0x1d0] sm:$0xf0]  ;;  %v4031_v8 = vld [vmem:[#allocation8 + $0x22c] sm:$0xf] }
 0x139   :  { %v1331_v22 = vmul.f32 %v1325_v20, %v1205_v29  ;;  %v4032_v29 = vld [vmem:[#allocation8 + $0x230] sm:$0xf0]  ;;  %v3486_v20 = vld [vmem:[#allocation8 + $0x3c] sm:$0xf0]  ;;  %v3689_v2 = vor.u32 %v4020_v10, %v3688_v7 }
 0x13a   :  { %2480 = vmatpush.bf16.msrb.mxu2 %v3513_v3  ;;  %v3556_v3 = vld [vmem:[#allocation8 + $0xc0] sm:$0xf] }
 0x13c   :  { %v1192_v58 = vpop.f32.mrf.mxu0 }
 0x13d   :  { %v1193_v62 = vadd.f32 %v1192_v58, %v1178_v19  ;;  %v1206_v4 = vpop.f32.mrf.mxu1  ;;  %v3605_v19 = vor.u32 %v3999_v16, %v3604_v56  ;;  %v3736_v58 = vld [vmem:[#allocation8 + $0x228] sm:$0xf]  ;;  %v3624_v56 = vld [vmem:[#allocation8 + $0x140] sm:$0xf]  ;;  %v4003_v16 = vld [vmem:[#allocation8 + $0x148] sm:$0xf0] }
 0x13e   :  { %2481 = vmatpush.bf16.msrb.mxu2 %v3501_v14  ;;  %v3582_v14 = vld [vmem:[#allocation8 + $0xfc] sm:$0xf0] }
 0x13f   :  { %v1207_v53 = vadd.f32 %v1206_v4, %v1193_v62  ;;  %v3737_v62 = vor.u32 %v4032_v29, %v3736_v58  ;;  %v3968_v4 = vld [vmem:[#allocation8 + $0x34] sm:$0xf]  ;;  %v3585_v15 = vor.u32 %v3992_v13, %v3582_v14  ;;  %v4017_v58 = vld [vmem:[#allocation8 + $0x1b8] sm:$0xf0]  ;;  %v3666_v13 = vld [vmem:[#allocation8 + $0x1a4] sm:$0xf0] }
 0x140   :  { %v3516_v14 = vld [vmem:[#allocation8 + $0x68] sm:$0xf] }
 0x141   :  { %v1334_v23 = vmul.f32 %v1328_v57, %v1207_v53  ;;  %v4004_v57 = vld [vmem:[#allocation8 + $0x154] sm:$0xf]  ;;  %2463 = vmatpush.bf16.msrb.mxu1 %v3737_v62  ;;  %v3489_v53 = vor.u32 %v3968_v4, %v3486_v20  ;;  %v3726_v4 = vld [vmem:[#allocation8 + $0x21c] sm:$0xf0] }
 0x142   :  { %v4028_v62 = vld [vmem:[#allocation8 + $0x214] sm:$0xf] }
 0x143   :  { %v1337_v50 = vpack.c.bf16 %v1334_v23, %v1331_v22  ;;  %v3630_v22 = vld [vmem:[#allocation8 + $0x15c] sm:$0xf0]  ;;  %2482 = vmatpush.bf16.msrb.mxu2 %v3489_v53  ;;  %v3729_v20 = vor.u32 %v4028_v62, %v3726_v4  ;;  %v3570_v53 = vld [vmem:[#allocation8 + $0xe4] sm:$0xf0]  ;;  %v3654_v62 = vld [vmem:[#allocation8 + $0x18c] sm:$0xf0] }
 0x144   :  { %v3633_v23 = vor.u32 %v4004_v57, %v3630_v22  ;;  %v3989_v57 = vld [vmem:[#allocation8 + $0xdc] sm:$0xf]  ;;  %v3504_v4 = vld [vmem:[#allocation8 + $0x50] sm:$0xf] }
 0x145   :  { %1854 = vmatmul.bf16.vlgmr.msrb.gmra.mxu0 %v1337_v50  ;;  %1896 = vmatmul.bf16.vlgmr.msrb.gmra.mxu3 %v1337_v50  ;;  %v3573_v22 = vor.u32 %v3989_v57, %v3570_v53  ;;  %v3973_v57 = vld [vmem:[#allocation8 + $0x58] sm:$0xf0] }
 0x146   :  { %1938 = vmatmul.bf16.vlgmr.msra.gmra.mxu2 %v1337_v50  ;;  %2449 = vmatpush.bf16.msrb.mxu0 %v3641_v48  ;;  %v3592_v50 = vld [vmem:[#allocation8 + $0x108] sm:$0xf]  ;;  %v4009_v48 = vld [vmem:[#allocation8 + $0x178] sm:$0xf0] }
 0x147   :  { %v3593_v43 = vor.u32 %v3996_v31, %v3592_v50  ;;  %2464 = vmatpush.bf16.msrb.mxu1 %v3725_v28  ;;  %2483 = vmatpush.bf16.msrb.mxu2 %v3477_v34  ;;  %v3649_v51 = vor.u32 %v4009_v48, %v3648_v47  ;;  %v4000_v50 = vld [vmem:[#allocation8 + $0x130] sm:$0xf0]  ;;  %v3717_v28 = vor.u32 %v4025_v24, %v3714_v33  ;;  %v3986_v34 = vld [vmem:[#allocation8 + $0xc4] sm:$0xf]  ;;  %v3588_v48 = vld [vmem:[#allocation8 + $0xf8] sm:$0xf] }
 0x148   :  { %v3553_v47 = vor.u32 %v3985_v46, %v3552_v45  ;;  %v3967_v24 = vld [vmem:[#allocation8 + $0x28] sm:$0xf0]  ;;  %v3732_v45 = vld [vmem:[#allocation8 + $0x218] sm:$0xf] }
 0x14a   :  { %2450 = vmatpush.bf16.msrb.mxu0 %v3629_v60  ;;  %v3594_v60 = vld [vmem:[#allocation8 + $0x114] sm:$0xf0] }
 0x14b   :  { %v3597_v1 = vor.u32 %v3995_v32, %v3594_v60  ;;  %v3991_v32 = vld [vmem:[#allocation8 + $0xe8] sm:$0xf0] }
 0x14e   :  { %2451 = vmatpush.bf16.msrb.mxu0 %v3617_v9  ;;  %v3557_v9 = vor.u32 %v3987_v5, %v3556_v3  ;;  %v3678_v3 = vld [vmem:[#allocation8 + $0x1bc] sm:$0xf0] }
 0x14f   :  { %v3528_v5 = vld [vmem:[#allocation8 + $0x80] sm:$0xf] }
 0x152   :  { %2452 = vmatpush.bf16.msrb.mxu0 %v3605_v19  ;;  %v3676_v19 = vld [vmem:[#allocation8 + $0x1b0] sm:$0xf] }
 0x153   :  { %v3677_v29 = vor.u32 %v4017_v58, %v3676_v19 }
 0x155   :  { %1910 = vmatmul.bf16.vlgmr.msra.gmra.mxu0 %v4387_v6  ;;  %v3509_v6 = vor.u32 %v3975_v38, %v3508_v30  ;;  %v4001_v30 = vld [vmem:[#allocation8 + $0x13c] sm:$0xf]  ;;  %v3580_v38 = vld [vmem:[#allocation8 + $0xf0] sm:$0xf] }
 0x156   :  { %2453 = vmatpush.bf16.msrb.mxu0 %v3593_v43  ;;  %v3621_v39 = vor.u32 %v4001_v30, %v3618_v37  ;;  %v3581_v27 = vor.u32 %v3993_v41, %v3580_v38  ;;  %v4014_v43 = vld [vmem:[#allocation8 + $0x1a0] sm:$0xf0]  ;;  %v3558_v30 = vld [vmem:[#allocation8 + $0xcc] sm:$0xf0]  ;;  %v3997_v41 = vld [vmem:[#allocation8 + $0x118] sm:$0xf0] }
 0x157   :  { %2438 = vmatpush.bf16.msra.mxu3 %v3509_v6  ;;  %v3713_v6 = vor.u32 %v4026_v26, %v3712_v42  ;;  %v3665_v21 = vor.u32 %v4014_v43, %v3664_v55  ;;  %v3561_v38 = vor.u32 %v3986_v34, %v3558_v30  ;;  %v3652_v26 = vld [vmem:[#allocation8 + $0x180] sm:$0xf]  ;;  %v3744_v34 = vld [vmem:[#allocation8 + $0x230] sm:$0xf]  ;;  %v4033_v30 = vld [vmem:[#allocation8 + $0x238] sm:$0xf0] }
 0x159   :  { %2465 = vmatpush.bf16.msrb.mxu1 %v3713_v6 }
 0x15a   :  { %2454 = vmatpush.bf16.msrb.mxu0 %v3581_v27  ;;  %v4011_v27 = vld [vmem:[#allocation8 + $0x188] sm:$0xf0] }
 0x15b   :  { %2439 = vmatpush.bf16.msra.mxu3 %v3497_v17  ;;  %v3465_v17 = vor.u32 %v3962_v44, %v3462_v36  ;;  %v3653_v6 = vor.u32 %v4011_v27, %v3652_v26  ;;  %v4022_v44 = vld [vmem:[#allocation8 + $0x1e4] sm:$0xf]  ;;  %v3702_v36 = vld [vmem:[#allocation8 + $0x1ec] sm:$0xf0]  ;;  %v3745_v27 = vor.u32 %v4033_v30, %v3744_v34 }
 0x15d   :  { %2484 = vmatpush.bf16.msrb.mxu2 %v3465_v17  ;;  %2466 = vmatpush.bf16.msrb.mxu1 %v3701_v25  ;;  %v3705_v17 = vor.u32 %v4022_v44, %v3702_v36  ;;  %v3576_v25 = vld [vmem:[#allocation8 + $0xe0] sm:$0xf]  ;;  %v3964_v44 = vld [vmem:[#allocation8 + $0x10] sm:$0xf0] }
 0x15f   :  { %2440 = vmatpush.bf16.msra.mxu3 %v3485_v52  ;;  %v3568_v52 = vld [vmem:[#allocation8 + $0xd8] sm:$0xf] }
 0x160   :  { %v3569_v40 = vor.u32 %v3990_v35, %v3568_v52  ;;  %v4019_v52 = vld [vmem:[#allocation8 + $0x1cc] sm:$0xf]  ;;  %v3690_v35 = vld [vmem:[#allocation8 + $0x1d4] sm:$0xf0] }
 0x161   :  { %2533 = vmatpush.bf16.msra.mxu2 %v3649_v51  ;;  %2467 = vmatpush.bf16.msrb.mxu1 %v3689_v2 }
 0x162   :  { %2455 = vmatpush.bf16.msrb.mxu0 %v3569_v40  ;;  %v3693_v40 = vor.u32 %v4019_v52, %v3690_v35 }
 0x163   :  { %2441 = vmatpush.bf16.msra.mxu3 %v3473_v61  ;;  %v3636_v61 = vld [vmem:[#allocation8 + $0x158] sm:$0xf] }
 0x164   :  { %v3637_v63 = vor.u32 %v4006_v0, %v3636_v61  ;;  %v3577_v61 = vor.u32 %v3991_v32, %v3576_v25 }
 0x165   :  { %2468 = vmatpush.bf16.msrb.mxu1 %v3677_v29  ;;  %v4010_v29 = vld [vmem:[#allocation8 + $0x184] sm:$0xf] }
 0x166   :  { %2534 = vmatpush.bf16.msra.mxu2 %v3637_v63  ;;  %2456 = vmatpush.bf16.msrb.mxu0 %v3557_v9  ;;  %v4016_v63 = vld [vmem:[#allocation8 + $0x1b4] sm:$0xf]  ;;  %v3979_v9 = vld [vmem:[#allocation8 + $0x88] sm:$0xf0] }
 0x167   :  { %2442 = vmatpush.bf16.msra.mxu3 %v3461_v11  ;;  %v3738_v11 = vld [vmem:[#allocation8 + $0x234] sm:$0xf0]  ;;  %v3681_v7 = vor.u32 %v4016_v63, %v3678_v3  ;;  %v3529_v10 = vor.u32 %v3979_v9, %v3528_v5  ;;  %v3696_v3 = vld [vmem:[#allocation8 + $0x1d0] sm:$0xf]  ;;  %v4021_v5 = vld [vmem:[#allocation8 + $0x1d8] sm:$0xf0] }
 0x168   :  { %v3741_v12 = vor.u32 %v4031_v8, %v3738_v11  ;;  %v3564_v8 = vld [vmem:[#allocation8 + $0xc8] sm:$0xf]  ;;  %v3988_v11 = vld [vmem:[#allocation8 + $0xd0] sm:$0xf0] }
 0x169   :  { %2469 = vmatpush.bf16.msrb.mxu1 %v3665_v21  ;;  %v3565_v2 = vor.u32 %v3988_v11, %v3564_v8  ;;  %v3480_v21 = vld [vmem:[#allocation8 + $0x20] sm:$0xf]  ;;  %v3697_v11 = vor.u32 %v4021_v5, %v3696_v3 }
 0x16a   :  { %2505 = vmatpush.bf16.msra.mxu0 %v3741_v12  ;;  %v4013_v12 = vld [vmem:[#allocation8 + $0x19c] sm:$0xf] }
 0x16b   :  { %2491 = vmatpush.bf16.msrb.mxu3 %v3645_v18  ;;  %v3625_v18 = vor.u32 %v4003_v16, %v3624_v56  ;;  %v3976_v56 = vld [vmem:[#allocation8 + $0x70] sm:$0xf0] }
 0x16d   :  { %2535 = vmatpush.bf16.msra.mxu2 %v3625_v18  ;;  %2470 = vmatpush.bf16.msrb.mxu1 %v3653_v6  ;;  %v3517_v18 = vor.u32 %v3976_v56, %v3516_v14  ;;  %v3468_v6 = vld [vmem:[#allocation8 + $0x8] sm:$0xf]  ;;  %v4018_v14 = vld [vmem:[#allocation8 + $0x1c0] sm:$0xf0] }
 0x16e   :  { %2506 = vmatpush.bf16.msra.mxu0 %v3729_v20  ;;  %v3657_v20 = vor.u32 %v4010_v29, %v3654_v62  ;;  %v3469_v46 = vor.u32 %v3964_v44, %v3468_v6  ;;  %v4012_v29 = vld [vmem:[#allocation8 + $0x190] sm:$0xf0] }
 0x16f   :  { %2492 = vmatpush.bf16.msrb.mxu3 %v3633_v23  ;;  %v3612_v23 = vld [vmem:[#allocation8 + $0x128] sm:$0xf] }
 0x170   :  { %v3613_v31 = vor.u32 %v4000_v50, %v3612_v23  ;;  %v3492_v23 = vld [vmem:[#allocation8 + $0x38] sm:$0xf]  ;;  %v3970_v50 = vld [vmem:[#allocation8 + $0x40] sm:$0xf0] }
 0x171   :  { %2519 = vmatpush.bf16.msra.mxu1 %v3553_v47 }
 0x172   :  { %2536 = vmatpush.bf16.msra.mxu2 %v3613_v31  ;;  %2507 = vmatpush.bf16.msra.mxu0 %v3717_v28  ;;  %v3493_v31 = vor.u32 %v3970_v50, %v3492_v23 }
 0x173   :  { %2493 = vmatpush.bf16.msrb.mxu3 %v3621_v39  ;;  %v3600_v39 = vld [vmem:[#allocation8 + $0x110] sm:$0xf] }
 0x174   :  { %v3601_v42 = vor.u32 %v3997_v41, %v3600_v39 }
 0x176   :  { %2537 = vmatpush.bf16.msra.mxu2 %v3601_v42  ;;  %2508 = vmatpush.bf16.msra.mxu0 %v3705_v17  ;;  %v4030_v17 = vld [vmem:[#allocation8 + $0x220] sm:$0xf0] }
 0x177   :  { %2494 = vmatpush.bf16.msrb.mxu3 %v3609_v49  ;;  %v3994_v49 = vld [vmem:[#allocation8 + $0x100] sm:$0xf0] }
 0x178   :  { %v3589_v51 = vor.u32 %v3994_v49, %v3588_v48 }
 0x17a   :  { %2538 = vmatpush.bf16.msra.mxu2 %v3589_v51  ;;  %2509 = vmatpush.bf16.msra.mxu0 %v3693_v40  ;;  %v3733_v51 = vor.u32 %v4030_v17, %v3732_v45  ;;  %v4027_v40 = vld [vmem:[#allocation8 + $0x208] sm:$0xf0] }
 0x17b   :  { %2495 = vmatpush.bf16.msrb.mxu3 %v3597_v1  ;;  %v3541_v1 = vor.u32 %v3982_v59, %v3540_v54  ;;  %v3720_v54 = vld [vmem:[#allocation8 + $0x200] sm:$0xf] }
 0x17d   :  { %2520 = vmatpush.bf16.msra.mxu1 %v3541_v1  ;;  %v3708_v1 = vld [vmem:[#allocation8 + $0x1e8] sm:$0xf] }
 0x17e   :  { %2539 = vmatpush.bf16.msra.mxu2 %v3577_v61  ;;  %2510 = vmatpush.bf16.msra.mxu0 %v3681_v7  ;;  %v4024_v61 = vld [vmem:[#allocation8 + $0x1f0] sm:$0xf0] }
 0x17f   :  { %2496 = vmatpush.bf16.msrb.mxu3 %v3585_v15  ;;  %v3669_v15 = vor.u32 %v4013_v12, %v3666_v13  ;;  %v3684_v13 = vld [vmem:[#allocation8 + $0x1b8] sm:$0xf] }
 0x180   :  { %v3685_v56 = vor.u32 %v4018_v14, %v3684_v13 }
 0x181   :  { %2521 = vmatpush.bf16.msra.mxu1 %v3529_v10 }
 0x182   :  { %2540 = vmatpush.bf16.msra.mxu2 %v3565_v2  ;;  %2511 = vmatpush.bf16.msra.mxu0 %v3669_v15 }
 0x183   :  { %2497 = vmatpush.bf16.msrb.mxu3 %v3573_v22  ;;  %v3505_v22 = vor.u32 %v3973_v57, %v3504_v4  ;;  %v2043_v4 = vld [vmem:[%s4483_s4] sm:$0x7]  ;;  %s4203_s4 = smov [#allocation10]  }
 0x184   :  { %v2047_v45 = vperm.slane %v2043_v4, 2  ;;  %s2571_s15 = sshll.u32 %s4203_s4, 4  ;;  %s2572_s15 = int_to_ptr.vmem [resolvable:$true] %s2571_s15 }
 0x185   :  { %2522 = vmatpush.bf16.msra.mxu1 %v3517_v18  ;;  %v4015_v18 = vld [vmem:[#allocation8 + $0x1a8] sm:$0xf0] }
 0x186   :  { %2512 = vmatpush.bf16.msra.mxu0 %v3657_v20 }
 0x187   :  { %2498 = vmatpush.bf16.msrb.mxu3 %v3561_v38  ;;  %v3481_v38 = vor.u32 %v3967_v24, %v3480_v21 }
 0x189   :  { %2523 = vmatpush.bf16.msra.mxu1 %v3505_v22 }
 0x18a   :  { %v1869_v16 = vpop.f32.mrf.mxu1 }
 0x18d   :  { %2524 = vmatpush.bf16.msra.mxu1 %v3493_v31 }
 0x190   :  { %v4467_v37 = vpop.f32.mrf.mxu2 }
 0x191   :  { %2525 = vmatpush.bf16.msra.mxu1 %v3481_v38 }
 0x192   :  { %v1871_v55 = vpop.f32.mrf.mxu1 }
 0x195   :  { %2526 = vmatpush.bf16.msra.mxu1 %v3469_v46 }
 0x198   :  { %v1829_v0 = vpop.f32.mrf.mxu2 }
 0x1ae   :  { %v1841_v60 = vpop.f32.mrf.mxu3  ;;  %v1883_v19 = vpop.f32.mrf.mxu2 }
 0x1af   :  { %v1842_v33 = vadd.f32 %v1841_v60, %v4467_v37  ;;  %v1884_v47 = vadd.f32 %v1883_v19, %v1869_v16  ;;  %v1925_v37 = vpop.f32.mrf.mxu1  ;;  %v3721_v60 = vor.u32 %v4027_v40, %v3720_v54  ;;  %v3672_v16 = vld [vmem:[#allocation8 + $0x1a0] sm:$0xf] }
 0x1b0   :  { %v3673_v19 = vor.u32 %v4015_v18, %v3672_v16 }
 0x1b6   :  { %v1843_v58 = vpop.f32.mrf.mxu3  ;;  %v1885_v39 = vpop.f32.mrf.mxu2 }
 0x1b7   :  { %v1844_v28 = vadd.f32 %v1843_v58, %v1829_v0  ;;  %v1886_v48 = vadd.f32 %v1885_v39, %v1871_v55  ;;  %v3709_v0 = vor.u32 %v4024_v61, %v3708_v1  ;;  %v1927_v7 = vpop.f32.mrf.mxu1  ;;  %v3660_v58 = vld [vmem:[#allocation8 + $0x188] sm:$0xf] }
 0x1b8   :  { %v3661_v62 = vor.u32 %v4012_v29, %v3660_v58 }
 0x1c2   :  { %v1855_v53 = vpop.f32.mrf.mxu0 }
 0x1c3   :  { %v1856_v42 = vadd.f32 %v1855_v53, %v1842_v33  ;;  %v2045_v53 = vperm.slane %v2043_v4, 0 }
 0x1c8   :  { %v1897_v43 = vpop.f32.mrf.mxu3 }
 0x1c9   :  { %v1898_v52 = vadd.f32 %v1897_v43, %v1884_v47  ;;  %v1939_v59 = vpop.f32.mrf.mxu2  ;;  %v2046_v43 = vperm.slane %v2043_v4, 1 }
 0x1ca   :  { %v1857_v41 = vpop.f32.mrf.mxu0 }
 0x1cb   :  { %v1858_v26 = vadd.f32 %v1857_v41, %v1844_v28 }
 0x1cd   :  { %v1944_v36 = vpack.c.bf16 %v1858_v26, %v1856_v42 }
 0x1cf   :  { %2443 = vmatmul.bf16.vlgmr.msra.gmra.mxu3 %v1944_v36  ;;  %2485 = vmatmul.bf16.vlgmr.msrb.gmra.mxu2 %v1944_v36 }
 0x1d0   :  { %v1899_v49 = vpop.f32.mrf.mxu3  ;;  %2547 = vmatpush.bf16.msra.mxu3 %v3745_v27 }
 0x1d1   :  { %v1900_v35 = vadd.f32 %v1899_v49, %v1886_v48  ;;  %v1941_v8 = vpop.f32.mrf.mxu2 }
 0x1d2   :  { %v1911_v25 = vpop.f32.mrf.mxu0 }
 0x1d3   :  { %v1945_v32 = vpack.c.bf16 %v1900_v35, %v1898_v52  ;;  %v1926_v63 = vadd.f32 %v1925_v37, %v1911_v25 }
 0x1d4   :  { %2548 = vmatpush.bf16.msra.mxu3 %v3733_v51 }
 0x1d5   :  { %2457 = vmatmul.bf16.vlgmr.msrb.gmra.mxu0 %v1945_v32  ;;  %v1940_v2 = vadd.f32 %v1939_v59, %v1926_v63 }
 0x1d8   :  { %2549 = vmatpush.bf16.msra.mxu3 %v3721_v60 }
 0x1da   :  { %v1913_v9 = vpop.f32.mrf.mxu0 }
 0x1db   :  { %v1928_v10 = vadd.f32 %v1927_v7, %v1913_v9 }
 0x1dc   :  { %2550 = vmatpush.bf16.msra.mxu3 %v3709_v0 }
 0x1dd   :  { %v1942_v12 = vadd.f32 %v1941_v8, %v1928_v10 }
 0x1df   :  { %v1946_v15 = vpack.c.bf16 %v1942_v12, %v1940_v2  ;;  %2499 = vmatmul.bf16.vlgmr.msrb.gmra.mxu3 %v1945_v32  ;;  %2541 = vmatmul.bf16.vlgmr.msra.gmra.mxu2 %v1945_v32 }
 0x1e0   :  { %2551 = vmatpush.bf16.msra.mxu3 %v3697_v11 }
 0x1e1   :  { %2471 = vmatmul.bf16.vlgmr.msrb.gmra.mxu1 %v1946_v15 }
 0x1e4   :  { %2552 = vmatpush.bf16.msra.mxu3 %v3685_v56 }
 0x1e5   :  { %2513 = vmatmul.bf16.vlgmr.msra.gmra.mxu0 %v1946_v15 }
 0x1e8   :  { %2553 = vmatpush.bf16.msra.mxu3 %v3673_v19 }
 0x1ec   :  { %2554 = vmatpush.bf16.msra.mxu3 %v3661_v62 }
 0x1ef   :  { %2555 = vmatmul.bf16.vlgmr.msra.gmra.mxu3 %v1946_v15 }
 0x1f1   :  { %2527 = vmatmul.bf16.vlgmr.msra.gmra.mxu1 %v1944_v36 }
 0x252   :  { %v2444_v20 = vpop.f32.mrf.mxu3  ;;  %v2458_v57 = vpop.f32.mrf.mxu0 }
 0x253   :  { %v2445_v22 = vadd.f32 %v2444_v20, %v2045_v53  ;;  %v2486_v23 = vpop.f32.mrf.mxu2 }
 0x254   :  { %v2487_v33 = vadd.f32 %v2486_v23, %v2046_v43 }
 0x255   :  { %v2459_v55 = vadd.f32 %v2458_v57, %v2445_v22 }
 0x25a   :  { %v2446_v50 = vpop.f32.mrf.mxu3  ;;  %v2460_v31 = vpop.f32.mrf.mxu0 }
 0x25b   :  { %v2447_v28 = vadd.f32 %v2446_v50, %v2045_v53  ;;  %v2488_v39 = vpop.f32.mrf.mxu2 }
 0x25c   :  { %v2489_v6 = vadd.f32 %v2488_v39, %v2046_v43 }
 0x25d   :  { %v2461_v41 = vadd.f32 %v2460_v31, %v2447_v28 }
 0x25e   :  { %v2472_v21 = vpop.f32.mrf.mxu1 }
 0x25f   :  { %v2473_v24 = vadd.f32 %v2472_v21, %v2459_v55 }
 0x261   :  { %2561 = vst [vmem:[#allocation10] sm:$0xff] %v2473_v24 }
 0x262   :  { %v2500_v34 = vpop.f32.mrf.mxu3  ;;  %v2514_v30 = vpop.f32.mrf.mxu0 }
 0x263   :  { %v2501_v38 = vadd.f32 %v2500_v34, %v2487_v33  ;;  %v2542_v47 = vpop.f32.mrf.mxu2 }
 0x265   :  { %v2515_v42 = vadd.f32 %v2514_v30, %v2501_v38 }
 0x266   :  { %v2474_v26 = vpop.f32.mrf.mxu1 }
 0x267   :  { %2562 = vst [vmem:[#allocation10 + $0x8] sm:$0xff] %v2515_v42  ;;  %v2475_v27 = vadd.f32 %v2474_v26, %v2461_v41 }
 0x269   :  { %2564 = vst [vmem:[#allocation10 + $0x18] sm:$0xff] %v2475_v27 }
 0x26a   :  { %v2502_v44 = vpop.f32.mrf.mxu3  ;;  %v2516_v17 = vpop.f32.mrf.mxu0 }
 0x26b   :  { %v2503_v36 = vadd.f32 %v2502_v44, %v2489_v6  ;;  %v2544_v40 = vpop.f32.mrf.mxu2 }
 0x26d   :  { %v2517_v46 = vadd.f32 %v2516_v17, %v2503_v36 }
 0x26e   :  { %v2528_v48 = vpop.f32.mrf.mxu1 }
 0x26f   :  { %2565 = vst [vmem:[#allocation10 + $0x20] sm:$0xff] %v2517_v46  ;;  %v2529_v37 = vadd.f32 %v2528_v48, %v2047_v45 }
 0x271   :  { %v2543_v49 = vadd.f32 %v2542_v47, %v2529_v37 }
 0x272   :  { %v2556_v51 = vpop.f32.mrf.mxu3 }
 0x273   :  { %v2557_v52 = vadd.f32 %v2556_v51, %v2543_v49 }
 0x275   :  { %2563 = vst [vmem:[#allocation10 + $0x10] sm:$0xff] %v2557_v52 }
 0x276   :  { %v2530_v35 = vpop.f32.mrf.mxu1 }
 0x277   :  { %v2531_v54 = vadd.f32 %v2530_v35, %v2047_v45 }
 0x279   :  { %v2545_v59 = vadd.f32 %v2544_v40, %v2531_v54 }
 0x27a   :  { %v2558_v25 = vpop.f32.mrf.mxu3 }
 0x27b   :  { %v2559_v32 = vadd.f32 %v2558_v25, %v2545_v59 }
 0x27d   :  { %2566 = vst [vmem:[#allocation10 + $0x28] sm:$0xff] %v2559_v32 }
 0x27e   :  { %2579 = dma.vmem_to_hbm [thread:$0]  %s2572_s15, 768, %s2574_s18, [#allocation4], %s4196_s26, %s4196_s26, %s4197_s27  }
 0x27f   :  { %4193 = dma.done.wait [#allocation4], 768  }
 0x280   :  { %4194 = vsyncadd [#allocation4], 4294966528 }
 0x281   :  { %2584 = vsyncpa [#allocation3], 1 }
 0x282   :  { %2585 = vsyncpa [#allocation6], 1 }
 0x283   :  { %2586 = vsyncpa [#allocation9], 1 }
 0x284   :  { %2587 = vsyncpa [#allocation4], 1 }

</bundles_post_ra>
